<compile_context>
chip_gen: v7x
topology: tpu7x:2x2x1
jax: 0.10.0
libtpu: 0.0.40
codegen_flags: <defaults>
</compile_context>

<pallas_src>
import jax
import jax.numpy as jnp
from jax.experimental import pallas as pl
from jax.experimental.pallas import tpu as pltpu

_MIN_LANE_TILE = 128    # one full lane width
_MAX_LANE_TILE = 1024   # default sweep pick (512-2048 all fit VMEM comfortably)


def _round_up(x, m):
    return ((x + m - 1) // m) * m


def _pick_lane_tile(batch, max_tile=_MAX_LANE_TILE, keep_two_steps=True):
    """Pick the lane tile: largest 128-multiple <= max_tile dividing `batch`,
    capped so the 'parallel' grid keeps >= 2 steps (v7x has 2 TensorCores;
    on single-TC v5e/v6e the one extra ~0.35us step is negligible).
    Returns (tile, n_full_blocks); any remainder is handled by a tail call."""
    cap = max_tile
    if keep_two_steps and batch > _MIN_LANE_TILE:
        cap = min(cap, max(_MIN_LANE_TILE,
                           _round_up(pl.cdiv(batch, 2), _MIN_LANE_TILE)))
    cands = [t for t in (2048, 1024, 512, 256, 128) if t <= cap]
    if not cands:
        cands = [_MIN_LANE_TILE]
    for t in cands:
        if batch % t == 0:
            return t, batch // t
    t = cands[0]
    return t, batch // t


def _fc_classifier_kernel(scal_ref, pa_ref, zv_ref, x_ref, w_ref, out_ref):
    # scal_ref (SMEM f32[6]): [sigma0_2, sigma2_2, fc_bias, wb0, wb1, wb2]
    s0 = scal_ref[0]
    s2 = scal_ref[1]          # sigma2_2 (sigma1_2 is unused by forward())
    fc_b = scal_ref[2]
    wb0 = scal_ref[3]         # (beta @ w)[c]  -- shared model scalars
    wb1 = scal_ref[4]
    wb2 = scal_ref[5]

    K, D, BT = zv_ref.shape

    y0 = x_ref[0]             # (K, BT)  X[:, 0]  (design col 0)
    y1 = x_ref[1]             # (K, BT)  X[:, 1]
    xc2 = x_ref[2]            # (K, BT)  X[:, 2]  (baseline-age column)
    pa = pa_ref[...]          # (1, BT)  predicted_age
    ba = xc2[0:1, :]          # (1, BT)  baseline_age = X[0, -1]
    delta = pa - ba           # (1, BT)

    # fc weight broadcast once across the sample lanes (hoisted; JAX does not
    # CSE broadcast_in_dim).
    w_b = jnp.broadcast_to(w_ref[...], (D, BT))          # (D, BT)

    # ---- the only pass over the (K, D, BT) block ----------------------------
    # ytu_j = sum_k Y[k, j] * (sum_d zv[k, d] * w[d]),  one lane == one sample.
    ytu0 = jnp.zeros((1, BT), jnp.float32)
    ytu1 = jnp.zeros((1, BT), jnp.float32)
    for k in range(K):                                    # K tiny & static
        uk = jnp.sum(zv_ref[k] * w_b, axis=0, keepdims=True)   # (1, BT)
        ytu0 = ytu0 + y0[k:k + 1, :] * uk
        ytu1 = ytu1 + y1[k:k + 1, :] * uk

    # ---- X-only Gram "scalars", lane-parallel over samples -------------------
    y00 = jnp.sum(y0 * y0, axis=0, keepdims=True)         # yty[0,0]
    y01 = jnp.sum(y0 * y1, axis=0, keepdims=True)         # yty[0,1] == yty[1,0]
    y11 = jnp.sum(y1 * y1, axis=0, keepdims=True)         # yty[1,1]
    yx02 = jnp.sum(y0 * xc2, axis=0, keepdims=True)       # (Y^T X)[0,2]
    yx12 = jnp.sum(y1 * xc2, axis=0, keepdims=True)       # (Y^T X)[1,2]

    c = s0 + s2
    off = 2.0 * s0 * s2
    m00 = c * y00 - off
    m01 = c * y01
    m11 = c * y11 - off
    # NOTE: no guard against singular M (matches torch.inverse semantics).
    inv_det = 1.0 / (m00 * m11 - m01 * m01)               # exact divide

    # r = s2*Y^T(zv - X beta) + s0*Y^T zv; only r @ w is ever needed:
    #   (r @ w)_j = (s0+s2)*ytu_j - s2 * sum_c (Y^T X)[j,c] * (beta @ w)[c]
    rw0 = c * ytu0 - s2 * (y00 * wb0 + y01 * wb1 + yx02 * wb2)
    rw1 = c * ytu1 - s2 * (y01 * wb0 + y11 * wb1 + yx12 * wb2)

    # b @ w = inv(M) (r @ w), analytic 2x2 inverse per sample lane.
    bw0 = (m11 * rw0 - m01 * rw1) * inv_det
    bw1 = (m00 * rw1 - m01 * rw0) * inv_det

    # logit = zv_pred @ w + bias = x_pred@(beta@w) + y_pred@(b@w) + bias
    logit = wb0 + delta * wb1 + ba * wb2 + bw0 + delta * bw1 + fc_b
    out_ref[...] = jax.nn.sigmoid(logit)


def _fc_blocks_call(scal, pa_1b, zv_kdb, x_3kb, w_d1, *, lane_tile, n_blocks):
    """Run `n_blocks` full lane tiles; inputs may extend past the covered
    lanes (the blocks only ever read in-bounds)."""
    K, D, _ = zv_kdb.shape
    return pl.pallas_call(
        _fc_classifier_kernel,
        out_shape=jax.ShapeDtypeStruct((1, n_blocks * lane_tile), jnp.float32),
        grid=(n_blocks,),
        in_specs=[
            pl.BlockSpec(memory_space=pltpu.MemorySpace.SMEM),        # scal (6,)
            pl.BlockSpec((1, lane_tile), lambda i: (0, i)),           # pa
            pl.BlockSpec((K, D, lane_tile), lambda i: (0, 0, i)),     # zv
            pl.BlockSpec((3, K, lane_tile), lambda i: (0, 0, i)),     # X cols
            pl.BlockSpec((D, 1), lambda i: (0, 0)),                   # w (shared)
        ],
        out_specs=pl.BlockSpec((1, lane_tile), lambda i: (0, i)),     # lane-dense
        compiler_params=pltpu.CompilerParams(
            dimension_semantics=("parallel",)),                       # megacore
    )(scal, pa_1b, zv_kdb, x_3kb, w_d1)


def fc_classifier_forward_batched(zv_kdb, X_bk3, predicted_age, params,
                                  fc_w, fc_b, *, max_lane_tile=_MAX_LANE_TILE):
    """Batched FC_classifier.forward.

    zv_kdb:        (K, D, B) float32 -- samples on the LAST axis (producer
                   layout; avoids an extra HBM pass over the dominant array).
    X_bk3:         (B, K, 3) design matrices (small; transposed in-wrapper).
    predicted_age: (B,)
    Returns (B, 1) = sigmoid(logit) per sample.  beta / sigmas / fc weights
    are shared across the batch, exactly as in the module.
    """
    zv_kdb = jnp.asarray(zv_kdb, jnp.float32)
    X_bk3 = jnp.asarray(X_bk3, jnp.float32)
    pa = jnp.asarray(predicted_age, jnp.float32).reshape(-1)
    beta = jnp.asarray(params['beta'], jnp.float32)            # (3, D)
    w = jnp.asarray(fc_w, jnp.float32).reshape(-1)             # (D,)
    bias = jnp.asarray(fc_b, jnp.float32).reshape(())

    K, D, B = zv_kdb.shape
    assert X_bk3.shape == (B, K, 3) and pa.shape == (B,)
    assert beta.shape == (3, D) and w.shape == (D,)

    # Shared parameter folding (3 dot products of length D, done once):
    wb = beta @ w                                              # (3,)
    scal = jnp.concatenate([
        jnp.stack([jnp.asarray(params['sigma0_2'], jnp.float32),
                   jnp.asarray(params['sigma2_2'], jnp.float32),
                   bias]),
        wb]).astype(jnp.float32)                               # (6,) -> SMEM
    w_d1 = w.reshape(D, 1)

    # Layout plumbing on the SMALL arrays only (zv is left untouched in HBM).
    x_3kb = jnp.transpose(X_bk3, (2, 1, 0))                    # (3, K, B)
    pa_1b = pa.reshape(1, B)

    bt, n_full = _pick_lane_tile(B, max_tile=max_lane_tile)
    n_main = n_full * bt
    outs = []

    if n_full > 0:
        outs.append(_fc_blocks_call(scal, pa_1b, zv_kdb, x_3kb, w_d1,
                                    lane_tile=bt, n_blocks=n_full))
    if n_main < B:
        # Ragged tail: slice + edge-pad ONLY the tail (a tiny copy), never the
        # whole zv.  Edge replication keeps padded lanes numerically benign.
        tail = B - n_main
        tbt = _round_up(tail, _MIN_LANE_TILE)
        pad3 = ((0, 0), (0, 0), (0, tbt - tail))
        tz = jnp.pad(zv_kdb[:, :, n_main:], pad3, mode='edge')
        tx = jnp.pad(x_3kb[:, :, n_main:], pad3, mode='edge')
        tp = jnp.pad(pa_1b[:, n_main:], ((0, 0), (0, tbt - tail)), mode='edge')
        tout = _fc_blocks_call(scal, tp, tz, tx, w_d1,
                               lane_tile=tbt, n_blocks=1)
        outs.append(tout[:, :tail])

    out = outs[0] if len(outs) == 1 else jnp.concatenate(outs, axis=1)
    return out[0].reshape(B, 1)


def fc_classifier_forward_batched_bkd(zv_bkd, X_bk3, predicted_age, params,
                                      fc_w, fc_b, **kw):
    """Convenience entry for (B, K, D)-laid-out zv.  NOTE: the transpose below
    is a full extra HBM pass over zv; prefer the (K, D, B) entry point."""
    zv_kdb = jnp.transpose(jnp.asarray(zv_bkd, jnp.float32), (1, 2, 0))
    return fc_classifier_forward_batched(zv_kdb, X_bk3, predicted_age, params,
                                         fc_w, fc_b, **kw)


def fc_classifier_forward(zv, X, predicted_age, params, fc_w, fc_b):
    """Single-sample API matching FC_classifier.forward; returns (1, 1)."""
    zv = jnp.asarray(zv, jnp.float32)          # (K, D)
    X = jnp.asarray(X, jnp.float32)            # (K, 3)
    pa = jnp.asarray(predicted_age, jnp.float32).reshape(1)
    out = fc_classifier_forward_batched(zv[:, :, None], X[None], pa,
                                        params, fc_w, fc_b)
    return out.reshape(1, 1)


def fc_classifier_reference(zv, X, predicted_age, params, fc_w, fc_b):
    """Pure-JAX mirror of the PyTorch forward(), for correctness checking."""
    hp = jax.lax.Precision.HIGHEST
    Y = X[:, :2]
    baseline_age = X[0, -1]
    beta = jnp.asarray(params['beta'], jnp.float32)
    s0 = jnp.float32(params['sigma0_2'])
    s2 = jnp.float32(params['sigma2_2'])
    yt = Y.T
    yty = jnp.matmul(yt, Y, precision=hp)
    yt_zv = jnp.matmul(yt, zv, precision=hp)
    xbeta = jnp.matmul(X, beta, precision=hp)
    yt_z_xbeta = jnp.matmul(yt, zv - xbeta, precision=hp)
    M = (s0 + s2) * yty - 2.0 * s0 * s2 * jnp.eye(2, dtype=jnp.float32)
    b = jnp.matmul(jnp.linalg.inv(M), s2 * yt_z_xbeta + s0 * yt_zv, precision=hp)
    x_pred = jnp.stack([jnp.float32(1.0),
                        predicted_age - baseline_age,
                        baseline_age]).reshape(1, 3)
    y_pred = x_pred[:, :2]
    zv_pred = (jnp.matmul(x_pred, beta, precision=hp)
               + jnp.matmul(y_pred, b, precision=hp))
    return jax.nn.sigmoid(jnp.matmul(zv_pred,
                                     jnp.asarray(fc_w, jnp.float32).T,
                                     precision=hp)
                          + jnp.asarray(fc_b, jnp.float32))


if __name__ == "__main__":
    key = jax.random.PRNGKey(0)
    k1, k2, k3, k4, k5, k6 = jax.random.split(key, 6)

    B, K, D = 1024, 8, 32   # B=1024 -> lane tile 512, 2 "parallel" grid steps

    baseline = 1.0 + 2.0 * jax.random.uniform(k5, (B,), jnp.float32)
    tp = 0.5 * jnp.arange(K, dtype=jnp.float32)            # visit offsets
    ages = baseline[:, None] + tp[None, :]                  # (B, K)
    X_b = jnp.stack([jnp.ones((B, K), jnp.float32),
                     ages - baseline[:, None],
                     jnp.broadcast_to(baseline[:, None], (B, K))],
                    axis=-1)                                # (B, K, 3)
    pred_ages = baseline + 4.0 + 2.0 * jax.random.uniform(k6, (B,), jnp.float32)

    # zv generated directly in the producer layout (K, D, B): the kernel path
    # never transposes or pad-copies the dominant array.
    zv_kdb = jax.random.normal(k1, (K, D, B), jnp.float32)

    params = {
        'beta': 0.1 * jax.random.normal(k2, (3, D), jnp.float32),
        'sigma0_2': 0.5,
        'sigma1_2': 0.3,
        'sigma2_2': 0.7,
    }
    fc_w = 0.05 * jax.random.normal(k3, (1, D), jnp.float32)
    fc_b = 0.01 * jax.random.normal(k4, (1,), jnp.float32)

    # --- batched kernel call (exact-tiling path) ------------------------------
    out = fc_classifier_forward_batched(zv_kdb, X_b, pred_ages, params, fc_w, fc_b)
    out = jax.block_until_ready(out)
    assert out.shape == (B, 1)

    # Pure-JAX reference (per-sample, vmapped).  The transpose below is only
    # for the correctness check; it is not on the kernel path.
    zv_bkd = jnp.transpose(zv_kdb, (2, 0, 1))
    ref = jax.vmap(lambda z, x, p:
                   fc_classifier_reference(z, x, p, params, fc_w, fc_b)[0, 0]
                   )(zv_bkd, X_b, pred_ages).reshape(B, 1)
    max_err = float(jnp.max(jnp.abs(out - ref)))
    assert jnp.allclose(out, ref, rtol=1e-4, atol=1e-4), ("batched mismatch",
                                                          max_err)

    # --- ragged-batch path (full tiles + small edge-padded tail call) ---------
    Br = 200
    out_r = fc_classifier_forward_batched(zv_kdb[:, :, :Br], X_b[:Br],
                                          pred_ages[:Br], params, fc_w, fc_b)
    out_r = jax.block_until_ready(out_r)
    assert out_r.shape == (Br, 1)
    assert jnp.allclose(out_r, ref[:Br], rtol=1e-4, atol=1e-4), "ragged mismatch"

    # --- single-sample (module-signature) path --------------------------------
    out1 = fc_classifier_forward(zv_bkd[0], X_b[0], pred_ages[0],
                                 params, fc_w, fc_b)
    out1 = jax.block_until_ready(out1)
    assert out1.shape == (1, 1)
    assert jnp.allclose(out1, ref[0:1], rtol=1e-4, atol=1e-4), "single mismatch"

    print("KERNEL_OK")
</pallas_src>

<mosaic_0001>
module attributes {stable_mosaic.version = 11 : i64} {
  func.func @_fc_classifier_kernel(%arg0: i32, %arg1: memref<6xf32, #tpu.memory_space<smem>>, %arg2: memref<1x512xf32, #tpu.memory_space<vmem>>, %arg3: memref<8x32x512xf32, #tpu.memory_space<vmem>>, %arg4: memref<3x8x512xf32, #tpu.memory_space<vmem>>, %arg5: memref<32x1xf32, #tpu.memory_space<vmem>>, %arg6: memref<1x512xf32, #tpu.memory_space<vmem>>) attributes {dimension_semantics = [#tpu.dimension_semantics<parallel>], iteration_bounds = array<i64: 2>, scalar_prefetch = 0 : i64, scratch_operands = 0 : i64, tpu.core_type = #tpu.core_type<tc>, window_params = [{transform_indices = @transform_0, window_bounds = array<i64: 6>}, {transform_indices = @transform_1, window_bounds = array<i64: 1, 512>}, {transform_indices = @transform_2, window_bounds = array<i64: 8, 32, 512>}, {transform_indices = @transform_3, window_bounds = array<i64: 3, 8, 512>}, {pipeline_mode = #tpu.pipeline_mode<synchronous>, transform_indices = @transform_4, window_bounds = array<i64: 32, 1>}, {transform_indices = @transform_5, window_bounds = array<i64: 1, 512>}]} {
    %c0 = arith.constant 0 : index
    %0 = memref.load %arg1[%c0] : memref<6xf32, #tpu.memory_space<smem>>
    %c1 = arith.constant 1 : index
    %1 = memref.load %arg1[%c1] : memref<6xf32, #tpu.memory_space<smem>>
    %c2 = arith.constant 2 : index
    %2 = memref.load %arg1[%c2] : memref<6xf32, #tpu.memory_space<smem>>
    %c3 = arith.constant 3 : index
    %3 = memref.load %arg1[%c3] : memref<6xf32, #tpu.memory_space<smem>>
    %c4 = arith.constant 4 : index
    %4 = memref.load %arg1[%c4] : memref<6xf32, #tpu.memory_space<smem>>
    %c5 = arith.constant 5 : index
    %5 = memref.load %arg1[%c5] : memref<6xf32, #tpu.memory_space<smem>>
    %c0_0 = arith.constant 0 : index
    %c0_1 = arith.constant 0 : index
    %c0_2 = arith.constant 0 : index
    %6 = vector.load %arg4[%c0_0, %c0_1, %c0_2] : memref<3x8x512xf32, #tpu.memory_space<vmem>>, vector<1x8x512xf32>
    %7 = vector.shape_cast %6 : vector<1x8x512xf32> to vector<8x512xf32>
    %c1_3 = arith.constant 1 : index
    %c0_4 = arith.constant 0 : index
    %c0_5 = arith.constant 0 : index
    %8 = vector.load %arg4[%c1_3, %c0_4, %c0_5] : memref<3x8x512xf32, #tpu.memory_space<vmem>>, vector<1x8x512xf32>
    %9 = vector.shape_cast %8 : vector<1x8x512xf32> to vector<8x512xf32>
    %c2_6 = arith.constant 2 : index
    %c0_7 = arith.constant 0 : index
    %c0_8 = arith.constant 0 : index
    %10 = vector.load %arg4[%c2_6, %c0_7, %c0_8] : memref<3x8x512xf32, #tpu.memory_space<vmem>>, vector<1x8x512xf32>
    %11 = vector.shape_cast %10 : vector<1x8x512xf32> to vector<8x512xf32>
    %c0_9 = arith.constant 0 : index
    %c0_10 = arith.constant 0 : index
    %12 = vector.load %arg2[%c0_9, %c0_10] : memref<1x512xf32, #tpu.memory_space<vmem>>, vector<1x512xf32>
    %13 = vector.extract_strided_slice %11 {offsets = [0, 0], sizes = [1, 512], strides = [1, 1]} : vector<8x512xf32> to vector<1x512xf32>
    %14 = arith.subf %12, %13 : vector<1x512xf32>
    %c0_11 = arith.constant 0 : index
    %c0_12 = arith.constant 0 : index
    %15 = vector.load %arg5[%c0_11, %c0_12] : memref<32x1xf32, #tpu.memory_space<vmem>>, vector<32x1xf32>
    %16 = vector.shape_cast %15 : vector<32x1xf32> to vector<32x1xf32>
    %17 = vector.broadcast %16 : vector<32x1xf32> to vector<32x512xf32>
    %cst = arith.constant 0.000000e+00 : f32
    %18 = vector.broadcast %cst : f32 to vector<1x512xf32>
    %cst_13 = arith.constant 0.000000e+00 : f32
    %19 = vector.broadcast %cst_13 : f32 to vector<1x512xf32>
    %c0_14 = arith.constant 0 : index
    %c0_15 = arith.constant 0 : index
    %c0_16 = arith.constant 0 : index
    %20 = vector.load %arg3[%c0_14, %c0_15, %c0_16] : memref<8x32x512xf32, #tpu.memory_space<vmem>>, vector<1x32x512xf32>
    %21 = vector.shape_cast %20 : vector<1x32x512xf32> to vector<32x512xf32>
    %22 = arith.mulf %21, %17 : vector<32x512xf32>
    %cst_17 = arith.constant dense<0.000000e+00> : vector<512xf32>
    %23 = vector.multi_reduction <add>, %22, %cst_17 [0] : vector<32x512xf32> to vector<512xf32>
    %24 = vector.shape_cast %23 : vector<512xf32> to vector<1x512xf32>
    %25 = vector.extract_strided_slice %7 {offsets = [0, 0], sizes = [1, 512], strides = [1, 1]} : vector<8x512xf32> to vector<1x512xf32>
    %26 = arith.mulf %25, %24 : vector<1x512xf32>
    %27 = arith.addf %18, %26 : vector<1x512xf32>
    %28 = vector.extract_strided_slice %9 {offsets = [0, 0], sizes = [1, 512], strides = [1, 1]} : vector<8x512xf32> to vector<1x512xf32>
    %29 = arith.mulf %28, %24 : vector<1x512xf32>
    %30 = arith.addf %19, %29 : vector<1x512xf32>
    %c1_18 = arith.constant 1 : index
    %c0_19 = arith.constant 0 : index
    %c0_20 = arith.constant 0 : index
    %31 = vector.load %arg3[%c1_18, %c0_19, %c0_20] : memref<8x32x512xf32, #tpu.memory_space<vmem>>, vector<1x32x512xf32>
    %32 = vector.shape_cast %31 : vector<1x32x512xf32> to vector<32x512xf32>
    %33 = arith.mulf %32, %17 : vector<32x512xf32>
    %cst_21 = arith.constant dense<0.000000e+00> : vector<512xf32>
    %34 = vector.multi_reduction <add>, %33, %cst_21 [0] : vector<32x512xf32> to vector<512xf32>
    %35 = vector.shape_cast %34 : vector<512xf32> to vector<1x512xf32>
    %36 = vector.extract_strided_slice %7 {offsets = [1, 0], sizes = [1, 512], strides = [1, 1]} : vector<8x512xf32> to vector<1x512xf32>
    %37 = arith.mulf %36, %35 : vector<1x512xf32>
    %38 = arith.addf %27, %37 : vector<1x512xf32>
    %39 = vector.extract_strided_slice %9 {offsets = [1, 0], sizes = [1, 512], strides = [1, 1]} : vector<8x512xf32> to vector<1x512xf32>
    %40 = arith.mulf %39, %35 : vector<1x512xf32>
    %41 = arith.addf %30, %40 : vector<1x512xf32>
    %c2_22 = arith.constant 2 : index
    %c0_23 = arith.constant 0 : index
    %c0_24 = arith.constant 0 : index
    %42 = vector.load %arg3[%c2_22, %c0_23, %c0_24] : memref<8x32x512xf32, #tpu.memory_space<vmem>>, vector<1x32x512xf32>
    %43 = vector.shape_cast %42 : vector<1x32x512xf32> to vector<32x512xf32>
    %44 = arith.mulf %43, %17 : vector<32x512xf32>
    %cst_25 = arith.constant dense<0.000000e+00> : vector<512xf32>
    %45 = vector.multi_reduction <add>, %44, %cst_25 [0] : vector<32x512xf32> to vector<512xf32>
    %46 = vector.shape_cast %45 : vector<512xf32> to vector<1x512xf32>
    %47 = vector.extract_strided_slice %7 {offsets = [2, 0], sizes = [1, 512], strides = [1, 1]} : vector<8x512xf32> to vector<1x512xf32>
    %48 = arith.mulf %47, %46 : vector<1x512xf32>
    %49 = arith.addf %38, %48 : vector<1x512xf32>
    %50 = vector.extract_strided_slice %9 {offsets = [2, 0], sizes = [1, 512], strides = [1, 1]} : vector<8x512xf32> to vector<1x512xf32>
    %51 = arith.mulf %50, %46 : vector<1x512xf32>
    %52 = arith.addf %41, %51 : vector<1x512xf32>
    %c3_26 = arith.constant 3 : index
    %c0_27 = arith.constant 0 : index
    %c0_28 = arith.constant 0 : index
    %53 = vector.load %arg3[%c3_26, %c0_27, %c0_28] : memref<8x32x512xf32, #tpu.memory_space<vmem>>, vector<1x32x512xf32>
    %54 = vector.shape_cast %53 : vector<1x32x512xf32> to vector<32x512xf32>
    %55 = arith.mulf %54, %17 : vector<32x512xf32>
    %cst_29 = arith.constant dense<0.000000e+00> : vector<512xf32>
    %56 = vector.multi_reduction <add>, %55, %cst_29 [0] : vector<32x512xf32> to vector<512xf32>
    %57 = vector.shape_cast %56 : vector<512xf32> to vector<1x512xf32>
    %58 = vector.extract_strided_slice %7 {offsets = [3, 0], sizes = [1, 512], strides = [1, 1]} : vector<8x512xf32> to vector<1x512xf32>
    %59 = arith.mulf %58, %57 : vector<1x512xf32>
    %60 = arith.addf %49, %59 : vector<1x512xf32>
    %61 = vector.extract_strided_slice %9 {offsets = [3, 0], sizes = [1, 512], strides = [1, 1]} : vector<8x512xf32> to vector<1x512xf32>
    %62 = arith.mulf %61, %57 : vector<1x512xf32>
    %63 = arith.addf %52, %62 : vector<1x512xf32>
    %c4_30 = arith.constant 4 : index
    %c0_31 = arith.constant 0 : index
    %c0_32 = arith.constant 0 : index
    %64 = vector.load %arg3[%c4_30, %c0_31, %c0_32] : memref<8x32x512xf32, #tpu.memory_space<vmem>>, vector<1x32x512xf32>
    %65 = vector.shape_cast %64 : vector<1x32x512xf32> to vector<32x512xf32>
    %66 = arith.mulf %65, %17 : vector<32x512xf32>
    %cst_33 = arith.constant dense<0.000000e+00> : vector<512xf32>
    %67 = vector.multi_reduction <add>, %66, %cst_33 [0] : vector<32x512xf32> to vector<512xf32>
    %68 = vector.shape_cast %67 : vector<512xf32> to vector<1x512xf32>
    %69 = vector.extract_strided_slice %7 {offsets = [4, 0], sizes = [1, 512], strides = [1, 1]} : vector<8x512xf32> to vector<1x512xf32>
    %70 = arith.mulf %69, %68 : vector<1x512xf32>
    %71 = arith.addf %60, %70 : vector<1x512xf32>
    %72 = vector.extract_strided_slice %9 {offsets = [4, 0], sizes = [1, 512], strides = [1, 1]} : vector<8x512xf32> to vector<1x512xf32>
    %73 = arith.mulf %72, %68 : vector<1x512xf32>
    %74 = arith.addf %63, %73 : vector<1x512xf32>
    %c5_34 = arith.constant 5 : index
    %c0_35 = arith.constant 0 : index
    %c0_36 = arith.constant 0 : index
    %75 = vector.load %arg3[%c5_34, %c0_35, %c0_36] : memref<8x32x512xf32, #tpu.memory_space<vmem>>, vector<1x32x512xf32>
    %76 = vector.shape_cast %75 : vector<1x32x512xf32> to vector<32x512xf32>
    %77 = arith.mulf %76, %17 : vector<32x512xf32>
    %cst_37 = arith.constant dense<0.000000e+00> : vector<512xf32>
    %78 = vector.multi_reduction <add>, %77, %cst_37 [0] : vector<32x512xf32> to vector<512xf32>
    %79 = vector.shape_cast %78 : vector<512xf32> to vector<1x512xf32>
    %80 = vector.extract_strided_slice %7 {offsets = [5, 0], sizes = [1, 512], strides = [1, 1]} : vector<8x512xf32> to vector<1x512xf32>
    %81 = arith.mulf %80, %79 : vector<1x512xf32>
    %82 = arith.addf %71, %81 : vector<1x512xf32>
    %83 = vector.extract_strided_slice %9 {offsets = [5, 0], sizes = [1, 512], strides = [1, 1]} : vector<8x512xf32> to vector<1x512xf32>
    %84 = arith.mulf %83, %79 : vector<1x512xf32>
    %85 = arith.addf %74, %84 : vector<1x512xf32>
    %c6 = arith.constant 6 : index
    %c0_38 = arith.constant 0 : index
    %c0_39 = arith.constant 0 : index
    %86 = vector.load %arg3[%c6, %c0_38, %c0_39] : memref<8x32x512xf32, #tpu.memory_space<vmem>>, vector<1x32x512xf32>
    %87 = vector.shape_cast %86 : vector<1x32x512xf32> to vector<32x512xf32>
    %88 = arith.mulf %87, %17 : vector<32x512xf32>
    %cst_40 = arith.constant dense<0.000000e+00> : vector<512xf32>
    %89 = vector.multi_reduction <add>, %88, %cst_40 [0] : vector<32x512xf32> to vector<512xf32>
    %90 = vector.shape_cast %89 : vector<512xf32> to vector<1x512xf32>
    %91 = vector.extract_strided_slice %7 {offsets = [6, 0], sizes = [1, 512], strides = [1, 1]} : vector<8x512xf32> to vector<1x512xf32>
    %92 = arith.mulf %91, %90 : vector<1x512xf32>
    %93 = arith.addf %82, %92 : vector<1x512xf32>
    %94 = vector.extract_strided_slice %9 {offsets = [6, 0], sizes = [1, 512], strides = [1, 1]} : vector<8x512xf32> to vector<1x512xf32>
    %95 = arith.mulf %94, %90 : vector<1x512xf32>
    %96 = arith.addf %85, %95 : vector<1x512xf32>
    %c7 = arith.constant 7 : index
    %c0_41 = arith.constant 0 : index
    %c0_42 = arith.constant 0 : index
    %97 = vector.load %arg3[%c7, %c0_41, %c0_42] : memref<8x32x512xf32, #tpu.memory_space<vmem>>, vector<1x32x512xf32>
    %98 = vector.shape_cast %97 : vector<1x32x512xf32> to vector<32x512xf32>
    %99 = arith.mulf %98, %17 : vector<32x512xf32>
    %cst_43 = arith.constant dense<0.000000e+00> : vector<512xf32>
    %100 = vector.multi_reduction <add>, %99, %cst_43 [0] : vector<32x512xf32> to vector<512xf32>
    %101 = vector.shape_cast %100 : vector<512xf32> to vector<1x512xf32>
    %102 = vector.extract_strided_slice %7 {offsets = [7, 0], sizes = [1, 512], strides = [1, 1]} : vector<8x512xf32> to vector<1x512xf32>
    %103 = arith.mulf %102, %101 : vector<1x512xf32>
    %104 = arith.addf %93, %103 : vector<1x512xf32>
    %105 = vector.extract_strided_slice %9 {offsets = [7, 0], sizes = [1, 512], strides = [1, 1]} : vector<8x512xf32> to vector<1x512xf32>
    %106 = arith.mulf %105, %101 : vector<1x512xf32>
    %107 = arith.addf %96, %106 : vector<1x512xf32>
    %108 = arith.mulf %7, %7 : vector<8x512xf32>
    %cst_44 = arith.constant dense<0.000000e+00> : vector<512xf32>
    %109 = vector.multi_reduction <add>, %108, %cst_44 [0] : vector<8x512xf32> to vector<512xf32>
    %110 = vector.shape_cast %109 : vector<512xf32> to vector<1x512xf32>
    %111 = arith.mulf %7, %9 : vector<8x512xf32>
    %cst_45 = arith.constant dense<0.000000e+00> : vector<512xf32>
    %112 = vector.multi_reduction <add>, %111, %cst_45 [0] : vector<8x512xf32> to vector<512xf32>
    %113 = vector.shape_cast %112 : vector<512xf32> to vector<1x512xf32>
    %114 = arith.mulf %9, %9 : vector<8x512xf32>
    %cst_46 = arith.constant dense<0.000000e+00> : vector<512xf32>
    %115 = vector.multi_reduction <add>, %114, %cst_46 [0] : vector<8x512xf32> to vector<512xf32>
    %116 = vector.shape_cast %115 : vector<512xf32> to vector<1x512xf32>
    %117 = arith.mulf %7, %11 : vector<8x512xf32>
    %cst_47 = arith.constant dense<0.000000e+00> : vector<512xf32>
    %118 = vector.multi_reduction <add>, %117, %cst_47 [0] : vector<8x512xf32> to vector<512xf32>
    %119 = vector.shape_cast %118 : vector<512xf32> to vector<1x512xf32>
    %120 = arith.mulf %9, %11 : vector<8x512xf32>
    %cst_48 = arith.constant dense<0.000000e+00> : vector<512xf32>
    %121 = vector.multi_reduction <add>, %120, %cst_48 [0] : vector<8x512xf32> to vector<512xf32>
    %122 = vector.shape_cast %121 : vector<512xf32> to vector<1x512xf32>
    %123 = arith.addf %0, %1 : f32
    %cst_49 = arith.constant 2.000000e+00 : f32
    %124 = arith.mulf %cst_49, %0 : f32
    %125 = arith.mulf %124, %1 : f32
    %126 = vector.broadcast %123 : f32 to vector<1x512xf32>
    %127 = arith.mulf %126, %110 : vector<1x512xf32>
    %128 = vector.broadcast %125 : f32 to vector<1x512xf32>
    %129 = arith.subf %127, %128 : vector<1x512xf32>
    %130 = vector.broadcast %123 : f32 to vector<1x512xf32>
    %131 = arith.mulf %130, %113 : vector<1x512xf32>
    %132 = vector.broadcast %123 : f32 to vector<1x512xf32>
    %133 = arith.mulf %132, %116 : vector<1x512xf32>
    %134 = vector.broadcast %125 : f32 to vector<1x512xf32>
    %135 = arith.subf %133, %134 : vector<1x512xf32>
    %136 = arith.mulf %129, %135 : vector<1x512xf32>
    %137 = arith.mulf %131, %131 : vector<1x512xf32>
    %138 = arith.subf %136, %137 : vector<1x512xf32>
    %cst_50 = arith.constant 1.000000e+00 : f32
    %139 = vector.broadcast %cst_50 : f32 to vector<1x512xf32>
    %140 = arith.divf %139, %138 : vector<1x512xf32>
    %141 = vector.broadcast %123 : f32 to vector<1x512xf32>
    %142 = arith.mulf %141, %104 : vector<1x512xf32>
    %143 = vector.broadcast %3 : f32 to vector<1x512xf32>
    %144 = arith.mulf %110, %143 : vector<1x512xf32>
    %145 = vector.broadcast %4 : f32 to vector<1x512xf32>
    %146 = arith.mulf %113, %145 : vector<1x512xf32>
    %147 = arith.addf %144, %146 : vector<1x512xf32>
    %148 = vector.broadcast %5 : f32 to vector<1x512xf32>
    %149 = arith.mulf %119, %148 : vector<1x512xf32>
    %150 = arith.addf %147, %149 : vector<1x512xf32>
    %151 = vector.broadcast %1 : f32 to vector<1x512xf32>
    %152 = arith.mulf %151, %150 : vector<1x512xf32>
    %153 = arith.subf %142, %152 : vector<1x512xf32>
    %154 = vector.broadcast %123 : f32 to vector<1x512xf32>
    %155 = arith.mulf %154, %107 : vector<1x512xf32>
    %156 = vector.broadcast %3 : f32 to vector<1x512xf32>
    %157 = arith.mulf %113, %156 : vector<1x512xf32>
    %158 = vector.broadcast %4 : f32 to vector<1x512xf32>
    %159 = arith.mulf %116, %158 : vector<1x512xf32>
    %160 = arith.addf %157, %159 : vector<1x512xf32>
    %161 = vector.broadcast %5 : f32 to vector<1x512xf32>
    %162 = arith.mulf %122, %161 : vector<1x512xf32>
    %163 = arith.addf %160, %162 : vector<1x512xf32>
    %164 = vector.broadcast %1 : f32 to vector<1x512xf32>
    %165 = arith.mulf %164, %163 : vector<1x512xf32>
    %166 = arith.subf %155, %165 : vector<1x512xf32>
    %167 = arith.mulf %135, %153 : vector<1x512xf32>
    %168 = arith.mulf %131, %166 : vector<1x512xf32>
    %169 = arith.subf %167, %168 : vector<1x512xf32>
    %170 = arith.mulf %169, %140 : vector<1x512xf32>
    %171 = arith.mulf %129, %166 : vector<1x512xf32>
    %172 = arith.mulf %131, %153 : vector<1x512xf32>
    %173 = arith.subf %171, %172 : vector<1x512xf32>
    %174 = arith.mulf %173, %140 : vector<1x512xf32>
    %175 = vector.broadcast %4 : f32 to vector<1x512xf32>
    %176 = arith.mulf %14, %175 : vector<1x512xf32>
    %177 = vector.broadcast %3 : f32 to vector<1x512xf32>
    %178 = arith.addf %177, %176 : vector<1x512xf32>
    %179 = vector.broadcast %5 : f32 to vector<1x512xf32>
    %180 = arith.mulf %13, %179 : vector<1x512xf32>
    %181 = arith.addf %178, %180 : vector<1x512xf32>
    %182 = arith.addf %181, %170 : vector<1x512xf32>
    %183 = arith.mulf %14, %174 : vector<1x512xf32>
    %184 = arith.addf %182, %183 : vector<1x512xf32>
    %185 = vector.broadcast %2 : f32 to vector<1x512xf32>
    %186 = arith.addf %184, %185 : vector<1x512xf32>
    %187 = arith.negf %186 : vector<1x512xf32>
    %188 = math.exp %187 : vector<1x512xf32>
    %cst_51 = arith.constant 1.000000e+00 : f32
    %189 = vector.broadcast %cst_51 : f32 to vector<1x512xf32>
    %190 = arith.addf %189, %188 : vector<1x512xf32>
    %191 = arith.divf %189, %190 : vector<1x512xf32>
    %c0_52 = arith.constant 0 : index
    %c0_53 = arith.constant 0 : index
    %192 = vector.load %arg6[%c0_52, %c0_53] : memref<1x512xf32, #tpu.memory_space<vmem>>, vector<1x512xf32>
    tpu.vector_store %arg6[%c0_52, %c0_53], %191 {strides = array<i32>} : memref<1x512xf32, #tpu.memory_space<vmem>>, vector<1x512xf32>,
    return
  }
  func.func @transform_0(%arg0: i32) -> i32 {
    %c0_i32 = arith.constant 0 : i32
    %c0_i32_0 = arith.constant 0 : i32
    return %c0_i32 : i32
  }
  func.func @transform_1(%arg0: i32) -> (i32, i32) {
    %c0_i32 = arith.constant 0 : i32
    %c0_i32_0 = arith.constant 0 : i32
    return %c0_i32, %arg0 : i32, i32
  }
  func.func @transform_2(%arg0: i32) -> (i32, i32, i32) {
    %c0_i32 = arith.constant 0 : i32
    %c0_i32_0 = arith.constant 0 : i32
    %c0_i32_1 = arith.constant 0 : i32
    return %c0_i32, %c0_i32_0, %arg0 : i32, i32, i32
  }
  func.func @transform_3(%arg0: i32) -> (i32, i32, i32) {
    %c0_i32 = arith.constant 0 : i32
    %c0_i32_0 = arith.constant 0 : i32
    %c0_i32_1 = arith.constant 0 : i32
    return %c0_i32, %c0_i32_0, %arg0 : i32, i32, i32
  }
  func.func @transform_4(%arg0: i32) -> (i32, i32) {
    %c0_i32 = arith.constant 0 : i32
    %c0_i32_0 = arith.constant 0 : i32
    %c0_i32_1 = arith.constant 0 : i32
    return %c0_i32, %c0_i32_0 : i32, i32
  }
  func.func @transform_5(%arg0: i32) -> (i32, i32) {
    %c0_i32 = arith.constant 0 : i32
    %c0_i32_0 = arith.constant 0 : i32
    return %c0_i32, %arg0 : i32, i32
  }
}

</mosaic_0001>

<bundles_post_ra>
// kernel: tpu_custom_call.1
= control target key start
LH: loop header
LB: loop body
LE: loop exit
PB: predicated region body
PF: predicated region fallthrough
CT: control target
= control target key end

     0   :  { %s3315_s0 = inlined_call_operand.vmem [shape: f32[6], index: 0, kind: input, shape index: {}]   ;;  %s3316_s1 = inlined_call_operand.vmem [shape: f32[1,1024], index: 1, kind: input, shape index: {}]   ;;  %s3317_s2 = inlined_call_operand.hbm [shape: f32[8,32,1024], index: 2, kind: input, shape index: {}]   ;;  %s3318_s3 = inlined_call_operand.hbm [shape: f32[3,8,1024], index: 3, kind: input, shape index: {}]   ;;  %s3319_s4 = inlined_call_operand.vmem [shape: f32[32,1], index: 4, kind: input, shape index: {}]   ;;  %s3320_s5 = inlined_call_operand.hbm [shape: f32[1,1024], index: 5, kind: output, shape index: {}]  }
   0x1   :  { %3332 = sst [smem:[#allocation18_spill]] %s3315_s0 }
   0x2   :  { %3333 = sst [smem:[#allocation19_spill]] %s3317_s2 }
   0x3   :  { %10 = vsyncpa [#allocation5], 0 }
   0x4   :  { %11 = vsyncpa [#allocation3], 0 }
   0x5   :  { %13 = vsyncpa [#allocation3 + $0x1], 0 }
   0x6   :  { %14 = vsyncpa [#allocation8], 0 }
   0x7   :  { %16 = vsyncpa [#allocation8 + $0x1], 0 }
   0x8   :  { %17 = vsyncpa [#allocation4], 0 }
   0x9   :  { %19 = vsyncpa [#allocation4 + $0x1], 0  ;;  %s2200_s18 = smov 0   ;;  %s2202_s19 = smov 0  }
   0xa   :  { %s2204_s20 = smov 0   ;;  %s2206_s21 = smov 0  }
   0xb LB: > { %s2221_s22 = sadd.s32 4294967295, %s2159_s21   ;;  %s1765_s23 = sadd.s32 4294967294, %s2159_s21   ;;  %s2159_s21 = sphi %s2206_s21, %s3367_s21   ;;  %s2155_s20 = sphi %s2204_s20, %s3366_s20   ;;  %s2151_s19 = sphi %s2202_s19, %s3365_s19   ;;  %s2147_s18 = sphi %s2200_s18, %s3364_s18  }
   0xc   : > { %s2225_s24 = sadd.s32 1, %s2159_s21   ;;  %s79_s25 = sadd.s32 1, %s2155_s20 }
   0xd   : > { %s76_s26 = ssub.s32 %s2159_s21, %s2225_s24  ;;  %p86_p0 = scmp.ne.s32.totalorder %s2155_s20, %s2151_s19 }
   0xe   : > { %p77_p1 = scmp.eq.s32.totalorder %s76_s26, 0  ;;  %p87_p2 = scmp.eq.s32.totalorder %s2159_s21, 0 }
   0xf   : > { %p92_p3 = scmp.ne.s32.totalorder %s2151_s19, %s2147_s18  ;;  %p3321_p4 = scmp.eq.s32.totalorder %s2221_s22, 0 }
  0x10   : > { %s2237_s27 = scalar_select %p77_p1, %s2155_s20, %s79_s25  }
  0x11   : > { %p2239_p5 = por %p87_p2, %p86_p0  ;;  %p2245_p6 = por %p3321_p4, %p92_p3 }
  0x12   : > { %3334 = sst [smem:[#allocation14_spill]] %s2237_s27  ;;  %p163_p7 = scmp.eq.s32.totalorder %s2221_s22, 1 }
  0x13   : > { %s3336_s29 = scalar_select %p2245_p6, 1, 0 }
  0x14   : > { %p169_p8 = scmp.eq.s32.totalorder %s1765_s23, 1  ;;  %p1766_p9 = scmp.ge.s32.totalorder %s2159_s21, 1 }
  0x15   : > { %p176_p10 = scmp.lt.s32.totalorder %s2159_s21, 3  ;;  %p2252_p11 = por %p163_p7, %p86_p0 }
  0x16   : > { %p2256_p12 = por %p169_p8, %p92_p3  ;;  %s3340_s0 = sld [smem:[#allocation18_spill]] }
  0x17   : > { %s3337_s30 = scalar_select %p2252_p11, 1, 0 }
  0x18   : > { %s3338_s6 = scalar_select %p2256_p12, 1, 0 }
  0x19   : > { %p2260_p13 = pnand %p1766_p9, %p176_p10  ;;  %p1941_p2 = scmp.lt.s32.totalorder %s2159_s21, 2 }
  0x1a   : > { %s2278_s12 = sand.u32 1, %s2155_s20  }
  0x1b   : > { %p1925_p1 = pneg %p2260_p13  ;;  %p2282_p3 = pnand %p1941_p2, %p2239_p5 }
  0x1c   : > { %s189_s10 = sshll.u32 %s3340_s0, 4  ;;  %s1769_s14 = sshll.u32 %s2278_s12, 10  ;;  %s190_s10 = int_to_ptr.vmem [resolvable:$true] %s189_s10 }
  0x1d   : > { %p2273_p7 = pnand %p1925_p1, %p3321_p4  ;;  %s2010_s15 = scalar_lea.vmem %s190_s10, 16 }
  0x1e   : > { %p2011_p8 = scmp.ne.s32.totalorder %s190_s10, %s2010_s15  ;;  %p2018_p1 = scmp.lt.s32.totalorder %s190_s10, %s190_s10 }
  0x1f   : > { %p2012_p9 = pneg %p2273_p7  ;;  %p2019_p4 = scmp.lt.s32.totalorder %s2010_s15, %s2010_s15 }
  0x21   : > { %p2013_p10 = pnand %p2012_p9, %p2011_p8  ;;  %p2020_p12 = por %p2019_p4, %p2018_p1 }
  0x23   : > { %p2014_p0 = pneg %p2013_p10 }
  0x25   : > { %p2021_p11 = pnand %p2020_p12, %p2014_p0 }
  0x27   : > { %2024 = shalt.err (!%p2021_p11)
}
  0x28   : > { %s2161_s16 = smov [#allocation2]   ;;  %s1910_s17 = sshll.u32 %s2159_s21, 9 }
  0x29   : > { %1928 = dma.vmem_to_smem (!%p2273_p7), %s190_s10, 16, %s2161_s16, [#allocation5]  }
  0x2a   : > { %s215_s23 = scalar_lea.vmem [#allocation6], %s1769_s14  ;;  %s3343_s2 = sld [smem:[#allocation19_spill]] }
  0x2b   : > { %s222_s25 = sshll.u32 %s215_s23, 4  ;;  %s212_s9 = scalar_lea.sflag [#allocation3], %s2278_s12  ;;  %s2299_s25 = int_to_ptr.vmem [resolvable:$true] %s222_s25 }
  0x2c   : > { %p2027_p5 = pneg %p2282_p3 }
  0x30   : > { %s2297_s8 = scalar_lea.hbm %s3343_s2, %s1910_s17  ;;  %s2030_s15 = scalar_lea.hbm %s3343_s2, 32768 }
  0x31   : > { %s2025_s11 = scalar_lea.hbm %s2297_s8, 16384  ;;  %p2031_p0 = scmp.lt.u32.totalorder %s2297_s8, %s3343_s2 }
  0x32   : > { %p2026_p4 = scmp.ne.s32.totalorder %s2297_s8, %s2025_s11  ;;  %p2032_p2 = scmp.lt.u32.totalorder %s2030_s15, %s2025_s11 }
  0x33   : > { %p2034_p8 = scmp.lt.u32.totalorder %s2025_s11, %s2297_s8 }
  0x34   : > { %p2028_p11 = pnand %p2027_p5, %p2026_p4  ;;  %p2033_p7 = por %p2032_p2, %p2031_p0 }
  0x36   : > { %p2029_p12 = pneg %p2028_p11  ;;  %p2035_p9 = por %p2034_p8, %p2033_p7 }
  0x38   : > { %p2036_p10 = pnand %p2035_p9, %p2029_p12 }
  0x3a   : > { %2039 = shalt.err (!%p2036_p10)
}
  0x3b   : > { %s2040_s26 = scalar_lea.vmem %s2299_s25, 16384  ;;  %s2162_s28 = smov [#allocation6]  }
  0x3c   : > { %p2041_p1 = scmp.ne.s32.totalorder %s2299_s25, %s2040_s26  ;;  %s2045_s10 = sshll.u32 %s2162_s28, 4  ;;  %s2046_s10 = int_to_ptr.vmem [resolvable:$false] %s2045_s10 }
  0x3d   : > { %s2047_s14 = scalar_lea.vmem %s2046_s10, 32768  ;;  %p2048_p6 = scmp.lt.s32.totalorder %s2299_s25, %s2046_s10 }
  0x3e   : > { %p2043_p4 = pnand %p2041_p1, %p2027_p5  ;;  %p2049_p0 = scmp.lt.s32.totalorder %s2047_s14, %s2040_s26 }
  0x40   : > { %p2044_p11 = pneg %p2043_p4  ;;  %p2050_p2 = por %p2049_p0, %p2048_p6 }
  0x42   : > { %p2051_p7 = pnand %p2050_p2, %p2044_p11 }
  0x44   : > { %2054 = shalt.err (!%p2051_p7)
}
  0x45   : > { %s2163_s11 = smov 1024   ;;  %s2164_s15 = smov 512  }
  0x46   : > { %s2165_s16 = smov 32   ;;  %s1913_s23 = smul.u32 96, %s2278_s12 }
  0x47   : > { %1932 = dma.hbm_to_vmem [thread:$0]  (!%p2282_p3), %s2297_s8, 16384, %s2299_s25, %s212_s9, %s2163_s11, %s2164_s15, %s2165_s16  }
  0x48   : > { %s2338_s10 = scalar_lea.hbm %s3318_s3, %s1910_s17  ;;  %s236_s14 = scalar_lea.vmem [#allocation7], %s1913_s23 }
  0x49   : > { %s243_s0 = sshll.u32 %s236_s14, 4  ;;  %s233_s2 = scalar_lea.sflag [#allocation8], %s2278_s12  ;;  %s2340_s0 = int_to_ptr.vmem [resolvable:$true] %s243_s0 }
  0x4a   : > { %s2055_s27 = scalar_lea.hbm %s2338_s10, 1536  ;;  %s2060_s17 = scalar_lea.hbm %s3318_s3, 3072 }
  0x4b   : > { %p2056_p6 = scmp.ne.s32.totalorder %s2338_s10, %s2055_s27  ;;  %p2061_p9 = scmp.lt.u32.totalorder %s2338_s10, %s3318_s3 }
  0x4c   : > { %p2062_p10 = scmp.lt.u32.totalorder %s2060_s17, %s2055_s27  ;;  %p2064_p4 = scmp.lt.u32.totalorder %s2055_s27, %s2338_s10 }
  0x4d   : > { %p2058_p12 = pnand %p2056_p6, %p2027_p5 }
  0x4e   : > { %p2063_p1 = por %p2062_p10, %p2061_p9 }
  0x4f   : > { %p2059_p8 = pneg %p2058_p12 }
  0x50   : > { %p2065_p11 = por %p2064_p4, %p2063_p1 }
  0x52   : > { %p2066_p0 = pnand %p2065_p11, %p2059_p8 }
  0x54   : > { %2069 = shalt.err (!%p2066_p0)
}
  0x55   : > { %s2070_s23 = scalar_lea.vmem %s2340_s0, 1536  ;;  %s2166_s28 = smov [#allocation7]  }
  0x56   : > { %p2071_p2 = scmp.ne.s32.totalorder %s2340_s0, %s2070_s23  ;;  %s2075_s14 = sshll.u32 %s2166_s28, 4  ;;  %s2076_s14 = int_to_ptr.vmem [resolvable:$false] %s2075_s14 }
  0x57   : > { %s2077_s25 = scalar_lea.vmem %s2076_s14, 3072  ;;  %p2078_p12 = scmp.lt.s32.totalorder %s2340_s0, %s2076_s14 }
  0x58   : > { %p2073_p7 = pnand %p2071_p2, %p2027_p5  ;;  %p2079_p9 = scmp.lt.s32.totalorder %s2077_s25, %s2070_s23 }
  0x5a   : > { %p2074_p6 = pneg %p2073_p7  ;;  %p2080_p10 = por %p2079_p9, %p2078_p12 }
  0x5c   : > { %p2081_p1 = pnand %p2080_p10, %p2074_p6 }
  0x5e   : > { %2084 = shalt.err (!%p2081_p1)
}
  0x5f   : > { %1935 = dma.hbm_to_vmem [thread:$0]  (!%p2282_p3), %s2338_s10, 1536, %s2340_s0, %s233_s2, %s2163_s11, %s2164_s15, %s2165_s16  }
  0x60   : > { %255 = sbr.rel (%p2260_p13) target bundleno = 521 (0x209), region = 40 }
  0x67   : > { %p3344_p5 = scmp.eq.s32.totalorder %s2221_s22, 0 }
  0x69   : > { %2130 = dma.done.wait (%p3344_p5), [#allocation5], 16   ;;  %p3345_p8 = pmov %p3344_p5 }
  0x6a   : > { %s2378_s27 = sand.u32 1, %s2151_s19   ;;  %p3346_p3 = scmp.ne.s32.totalorder %s3336_s29, 0 }
  0x6b   : > { %2132 = vsyncadd (%p3345_p8), [#allocation5], 4294967280  ;;  %s1776_s13 = sshll.u32 %s2378_s27, 10  ;;  %s262_s12 = scalar_lea.sflag [#allocation3], %s2378_s27 }
  0x6c   : > { %s2382_s8 = scalar_lea.vmem [#allocation6], %s1776_s13 }
  0x6d   : > { %2134 = dma.done.wait (%p3346_p3), %s262_s12, 16384  }
  0x6e   : > { %2136 = vsyncadd (%p3346_p3), %s262_s12, 4294950912  ;;  %s1914_s0 = smul.u32 96, %s2378_s27  ;;  %s271_s2 = scalar_lea.sflag [#allocation8], %s2378_s27 }
  0x70   : > { %s2390_s7 = scalar_lea.vmem [#allocation7], %s1914_s0 }
  0x71   : > { %2138 = dma.done.wait (%p3346_p3), %s271_s2, 1536  }
  0x72   : > { %2140 = vsyncadd (%p3346_p3), %s271_s2, 4294965760 }
  0x73   : > { %279 = sfence }
  0x74   : > { %v372_v0 = vld [vmem:[%s3319_s4 + $0x10] sm:$0xff]  ;;  %v370_v1 = vld [vmem:[%s3319_s4] sm:$0xff]  ;;  %v2167_v2 = vmov 0   ;;  %v373_v3 = vld [vmem:[%s3319_s4 + $0x18] sm:$0xff]  ;;  %v2168_v5 = vmov 1966171168   ;;  %v3324_v7 = vlaneseq }
  0x75   : > { %1983 = vset.pattern.permute.xlu1 %v2167_v2  ;;  %1982 = vset.pattern.permute.xlu0 %v2167_v2  ;;  %v371_v4 = vld [vmem:[%s3319_s4 + $0x8] sm:$0xff]  ;;  %v347_v6 = vunpack.c.l.s4 %v2168_v5  ;;  %v1788_v10 = vld [vmem:[%s2390_s7 + $0x40] sm:$0xff]  ;;  %v1790_v12 = vld [vmem:[%s2390_s7 + $0x50] sm:$0xff]  ;;  %s1778_s23 = sshll.u32 %s2221_s22, 2  ;;  %s3012_s12 = sld [smem:[#allocation2]] }
  0x76   : > { %386 = vperm.xlu1 %1983, %v372_v0   ;;  %376 = vperm.xlu0 %1982, %v370_v1   ;;  %v350_v9 = vshrl.u32 %v3324_v7, 7  ;;  %v1789_v11 = vld [vmem:[%s2390_s7 + $0x48] sm:$0xff]  ;;  %v1791_v13 = vld [vmem:[%s2390_s7 + $0x58] sm:$0xff]  ;;  %v394_v20 = vld [vmem:[%s2382_s8] sm:$0xff]  ;;  %p2495_p13 = scmp.lt.s32.totalorder %s1778_s23, 7  ;;  %s3052_s0 = sld [smem:[#allocation2 + $0x3]] }
  0x77   : > { %v348_v8 = vunpack.c.0.s8 %v347_v6  ;;  %v344_v14 = vcombine.low %v1788_v10, %v1789_v11  ;;  %v345_v15 = vcombine.low %v1790_v12, %v1791_v13  ;;  %v395_v21 = vld [vmem:[%s2382_s8 + $0x8] sm:$0xff]  ;;  %v396_v22 = vld [vmem:[%s2382_s8 + $0x10] sm:$0xff]  ;;  %v397_v23 = vld [vmem:[%s2382_s8 + $0x18] sm:$0xff]  ;;  %s3124_s16 = sld [smem:[#allocation2 + $0x5]]  ;;  %s1780_s10 = sld [smem:[#allocation2 + $0x2]] }
  0x78   : > { %v402_v24 = vld [vmem:[%s2382_s8 + $0x40] sm:$0xff]  ;;  %v1793_v26 = vld [vmem:[%s2382_s8 + $0x88] sm:$0xff]  ;;  %v1794_v27 = vld [vmem:[%s2382_s8 + $0x90] sm:$0xff]  ;;  %s3369_s23 = smov (!%p2495_p13, %s1778_s23), 7  ;;  %s1777_s29 = sshll.u32 %s2378_s27, 2 }
  0x79   : > { %v2413_v16 = vsub.s32 %v348_v8, %v350_v9  ;;  %v1792_v25 = vld [vmem:[%s2382_s8 + $0x80] sm:$0xff]  ;;  %v1795_v28 = vld [vmem:[%s2382_s8 + $0x98] sm:$0xff]  ;;  %v403_v29 = vld [vmem:[%s2382_s8 + $0x48] sm:$0xff]  ;;  %s314_s13 = scalar_lea.vmem %s3316_s1, %s3369_s23  ;;  %s1912_s17 = sshll.u32 %s2221_s22, 6 }
  0x7a   : > { %391 = vperm.xlu1 %1983, %v373_v3   ;;  %381 = vperm.xlu0 %1982, %v371_v4   ;;  %v404_v30 = vld [vmem:[%s2382_s8 + $0x50] sm:$0xff]  ;;  %v405_v31 = vld [vmem:[%s2382_s8 + $0x58] sm:$0xff]  ;;  %v398_v35 = vld [vmem:[%s2382_s8 + $0x20] sm:$0xff]  ;;  %s310_s9 = scalar_lea.vmem [#allocation9], %s1777_s29  ;;  %s3271_s14 = scalar_lea.hbm %s3320_s5, %s1912_s17 }
  0x7b   : > { %3347 = vst [vmem:[#allocation15_spill] sm:$0xff] %v2413_v16  ;;  %v352_v17 = vrot.slane %v344_v14, %v2413_v16  ;;  %v359_v18 = vrot.slane %v345_v15, %v2413_v16  ;;  %v399_v36 = vld [vmem:[%s2382_s8 + $0x28] sm:$0xff]  ;;  %v1800_v37 = vld [vmem:[%s2382_s8 + $0xc0] sm:$0xff]  ;;  %v1802_v43 = vld [vmem:[%s2382_s8 + $0xd0] sm:$0xff]  ;;  %s1382_s2 = smul.f32 2.0, %s3012_s12  ;;  %s1651_s26 = sshll.u32 %s310_s9, 4  ;;  %s3273_s26 = int_to_ptr.vmem [resolvable:$true] %s1651_s26 }
  0x7c   : > { %v1801_v42 = vld [vmem:[%s2382_s8 + $0xc8] sm:$0xff]  ;;  %v1803_v44 = vld [vmem:[%s2382_s8 + $0xd8] sm:$0xff]  ;;  %v400_v45 = vld [vmem:[%s2382_s8 + $0x30] sm:$0xff]  ;;  %s1637_s25 = scalar_lea.sflag [#allocation4], %s2378_s27  ;;  %p3360_p11 = scmp.ne.s32.totalorder %s3337_s30, 0 }
  0x7d   : > { %v360_v19 = vcombine.low %v352_v17, %v359_v18  ;;  %v401_v46 = vld [vmem:[%s2382_s8 + $0x38] sm:$0xff]  ;;  %v406_v47 = vld [vmem:[%s2382_s8 + $0x60] sm:$0xff]  ;;  %v407_v52 = vld [vmem:[%s2382_s8 + $0x68] sm:$0xff]  ;;  %s2169_s22 = smov [#allocation9]  }
  0x7e   : > { %v408_v53 = vld [vmem:[%s2382_s8 + $0x70] sm:$0xff]  ;;  %v409_v54 = vld [vmem:[%s2382_s8 + $0x78] sm:$0xff]  ;;  %v1796_v61 = vld [vmem:[%s2382_s8 + $0xa0] sm:$0xff] }
  0x7f   : > { %v2434_v34 = vrot.slane %v360_v19, %v2413_v16  ;;  %v1797_v6 = vld [vmem:[%s2382_s8 + $0xa8] sm:$0xff]  ;;  %v1798_v8 = vld [vmem:[%s2382_s8 + $0xb0] sm:$0xff]  ;;  %v1799_v9 = vld [vmem:[%s2382_s8 + $0xb8] sm:$0xff] }
  0x80   : > { %v1804_v14 = vld [vmem:[%s2382_s8 + $0xe0] sm:$0xff] }
  0xf5   : > { %v2429_v32 = vpop.permute.xlu1 %386  ;;  %v2431_v33 = vpop.permute.xlu0 %376 }
  0xf6   : > { %3348 = vst [vmem:[#allocation16_spill] sm:$0xff] %v2429_v32  ;;  %v410_v38 = vmul.f32 %v394_v20, %v2431_v33  ;;  %v411_v39 = vmul.f32 %v395_v21, %v2431_v33  ;;  %v412_v40 = vmul.f32 %v396_v22, %v2431_v33  ;;  %v413_v41 = vmul.f32 %v397_v23, %v2431_v33  ;;  %v1805_v20 = vld [vmem:[%s2382_s8 + $0xe8] sm:$0xff]  ;;  %v1806_v21 = vld [vmem:[%s2382_s8 + $0xf0] sm:$0xff]  ;;  %v1807_v22 = vld [vmem:[%s2382_s8 + $0xf8] sm:$0xff] }
  0xf7   : > { %v418_v48 = vmul.f32 %v402_v24, %v2429_v32  ;;  %v419_v49 = vmul.f32 %v403_v29, %v2429_v32  ;;  %v420_v50 = vmul.f32 %v404_v30, %v2429_v32  ;;  %v421_v51 = vmul.f32 %v405_v31, %v2429_v32 }
  0xf8   : > { %v495_v55 = vmul.f32 %v1792_v25, %v2431_v33  ;;  %v496_v56 = vmul.f32 %v1793_v26, %v2431_v33  ;;  %v497_v57 = vmul.f32 %v1794_v27, %v2431_v33  ;;  %v498_v58 = vmul.f32 %v1795_v28, %v2431_v33 }
  0xf9   : > { %v2460_v59 = vpop.permute.xlu1 %391  ;;  %v2462_v60 = vpop.permute.xlu0 %381  ;;  %v503_v62 = vmul.f32 %v1800_v37, %v2429_v32  ;;  %v504_v63 = vmul.f32 %v1801_v42, %v2429_v32  ;;  %v505_v0 = vmul.f32 %v1802_v43, %v2429_v32  ;;  %v506_v1 = vmul.f32 %v1803_v44, %v2429_v32 }
  0xfa   : > { %v414_v2 = vmul.f32 %v398_v35, %v2462_v60  ;;  %v415_v3 = vmul.f32 %v399_v36, %v2462_v60  ;;  %v416_v4 = vmul.f32 %v400_v45, %v2462_v60  ;;  %v417_v5 = vmul.f32 %v401_v46, %v2462_v60 }
  0xfb   : > { %v422_v10 = vmul.f32 %v406_v47, %v2460_v59  ;;  %v423_v11 = vmul.f32 %v407_v52, %v2460_v59  ;;  %v424_v12 = vmul.f32 %v408_v53, %v2460_v59  ;;  %v425_v13 = vmul.f32 %v409_v54, %v2460_v59 }
  0xfc   : > { %v426_v15 = vadd.f32 %v414_v2, %v410_v38  ;;  %v435_v17 = vadd.f32 %v415_v3, %v411_v39  ;;  %v444_v18 = vadd.f32 %v416_v4, %v412_v40  ;;  %v453_v19 = vadd.f32 %v417_v5, %v413_v41 }
  0xfd   : > { %v499_v23 = vmul.f32 %v1796_v61, %v2462_v60  ;;  %v500_v24 = vmul.f32 %v1797_v6, %v2462_v60  ;;  %v501_v25 = vmul.f32 %v1798_v8, %v2462_v60  ;;  %v502_v26 = vmul.f32 %v1799_v9, %v2462_v60 }
  0xfe   : > { %v427_v27 = vadd.f32 %v426_v15, %v418_v48  ;;  %v436_v28 = vadd.f32 %v435_v17, %v419_v49  ;;  %v445_v29 = vadd.f32 %v444_v18, %v420_v50  ;;  %v454_v30 = vadd.f32 %v453_v19, %v421_v51 }
  0xff   : > { %v507_v31 = vmul.f32 %v1804_v14, %v2460_v59  ;;  %v508_v35 = vmul.f32 %v1805_v20, %v2460_v59  ;;  %v509_v36 = vmul.f32 %v1806_v21, %v2460_v59  ;;  %v510_v37 = vmul.f32 %v1807_v22, %v2460_v59  ;;  %v2510_v22 = vld [vmem:[%s2390_s7] sm:$0xff] }
 0x100   : > { %v428_v38 = vadd.f32 %v427_v27, %v422_v10  ;;  %v437_v39 = vadd.f32 %v436_v28, %v423_v11  ;;  %v446_v40 = vadd.f32 %v445_v29, %v424_v12  ;;  %v455_v41 = vadd.f32 %v454_v30, %v425_v13  ;;  %v2513_v28 = vld [vmem:[%s2390_s7 + $0x8] sm:$0xff]  ;;  %v2516_v29 = vld [vmem:[%s2390_s7 + $0x10] sm:$0xff]  ;;  %v2519_v30 = vld [vmem:[%s2390_s7 + $0x18] sm:$0xff] }
 0x101   : > { %v511_v42 = vadd.f32 %v499_v23, %v495_v55  ;;  %v520_v43 = vadd.f32 %v500_v24, %v496_v56  ;;  %v529_v44 = vadd.f32 %v501_v25, %v497_v57  ;;  %v538_v45 = vadd.f32 %v502_v26, %v498_v58  ;;  %v339_v23 = vld [vmem:[%s314_s13] sm:$0xf]  ;;  %s2085_s13 = scalar_lea.vmem %s3273_s26, 64 }
 0x102   : > { %v429_v46 = vrot.slane %v428_v38, 4  ;;  %v438_v47 = vrot.slane %v437_v39, 4  ;;  %v447_v48 = vrot.slane %v446_v40, 4  ;;  %v456_v49 = vrot.slane %v455_v41, 4  ;;  %p2086_p4 = scmp.ne.s32.totalorder %s3273_s26, %s2085_s13 }
 0x103   : > { %v512_v50 = vadd.f32 %v511_v42, %v503_v62  ;;  %v521_v51 = vadd.f32 %v520_v43, %v504_v63  ;;  %v530_v52 = vadd.f32 %v529_v44, %v505_v0  ;;  %v539_v53 = vadd.f32 %v538_v45, %v506_v1 }
 0x104   : > { %v430_v54 = vadd.f32 %v429_v46, %v428_v38  ;;  %v439_v61 = vadd.f32 %v438_v47, %v437_v39  ;;  %v448_v2 = vadd.f32 %v447_v48, %v446_v40  ;;  %v457_v55 = vadd.f32 %v456_v49, %v455_v41  ;;  %v2522_v38 = vld [vmem:[%s2390_s7 + $0x20] sm:$0xff]  ;;  %v2525_v39 = vld [vmem:[%s2390_s7 + $0x28] sm:$0xff]  ;;  %v2528_v40 = vld [vmem:[%s2390_s7 + $0x30] sm:$0xff]  ;;  %p2087_p0 = pnand %p2086_p4, %p3360_p11 }
 0x105   : > { %v513_v56 = vadd.f32 %v512_v50, %v507_v31  ;;  %v522_v57 = vadd.f32 %v521_v51, %v508_v35  ;;  %v531_v58 = vadd.f32 %v530_v52, %v509_v36  ;;  %v540_v3 = vadd.f32 %v539_v53, %v510_v37  ;;  %v1808_v49 = vld [vmem:[%s2382_s8 + $0x100] sm:$0xff]  ;;  %v1809_v50 = vld [vmem:[%s2382_s8 + $0x108] sm:$0xff]  ;;  %v1810_v51 = vld [vmem:[%s2382_s8 + $0x110] sm:$0xff] }
 0x106   : > { %v431_v4 = vrot.slane %v430_v54, 2  ;;  %v440_v5 = vrot.slane %v439_v61, 2  ;;  %v449_v6 = vrot.slane %v448_v2, 2  ;;  %v458_v62 = vrot.slane %v457_v55, 2  ;;  %v2540_v52 = vld [vmem:[%s2390_s7 + $0x38] sm:$0xff]  ;;  %p2088_p2 = pneg %p2087_p0 }
 0x107   : > { %v514_v63 = vrot.slane %v513_v56, 4  ;;  %v523_v0 = vrot.slane %v522_v57, 4  ;;  %v532_v1 = vrot.slane %v531_v58, 4  ;;  %v541_v8 = vrot.slane %v540_v3, 4 }
 0x108   : > { %v432_v9 = vadd.f32 %v431_v4, %v430_v54  ;;  %v441_v10 = vadd.f32 %v440_v5, %v439_v61  ;;  %v450_v11 = vadd.f32 %v449_v6, %v448_v2  ;;  %v459_v12 = vadd.f32 %v458_v62, %v457_v55  ;;  %v1811_v2 = vld [vmem:[%s2382_s8 + $0x118] sm:$0xff]  ;;  %v1812_v55 = vld [vmem:[%s2382_s8 + $0x120] sm:$0xff]  ;;  %v1813_v4 = vld [vmem:[%s2382_s8 + $0x128] sm:$0xff] }
 0x109   : > { %v515_v13 = vadd.f32 %v514_v63, %v513_v56  ;;  %v524_v14 = vadd.f32 %v523_v0, %v522_v57  ;;  %v533_v15 = vadd.f32 %v532_v1, %v531_v58  ;;  %v542_v17 = vadd.f32 %v541_v8, %v540_v3  ;;  %v1814_v5 = vld [vmem:[%s2382_s8 + $0x130] sm:$0xff] }
 0x10a   : > { %v433_v18 = vrot.slane %v432_v9, 1  ;;  %v442_v19 = vrot.slane %v441_v10, 1  ;;  %v451_v20 = vrot.slane %v450_v11, 1  ;;  %v460_v21 = vrot.slane %v459_v12, 1 }
 0x10b   : > { %v516_v24 = vrot.slane %v515_v13, 2  ;;  %v525_v25 = vrot.slane %v524_v14, 2  ;;  %v534_v26 = vrot.slane %v533_v15, 2  ;;  %v543_v27 = vrot.slane %v542_v17, 2 }
 0x10c   : > { %v434_v31 = vadd.f32 %v433_v18, %v432_v9  ;;  %v443_v35 = vadd.f32 %v442_v19, %v441_v10  ;;  %v452_v36 = vadd.f32 %v451_v20, %v450_v11  ;;  %v461_v37 = vadd.f32 %v460_v21, %v459_v12  ;;  %v1815_v20 = vld [vmem:[%s2382_s8 + $0x138] sm:$0xff] }
 0x10d   : > { %v517_v41 = vadd.f32 %v516_v24, %v515_v13  ;;  %v526_v42 = vadd.f32 %v525_v25, %v524_v14  ;;  %v535_v43 = vadd.f32 %v534_v26, %v533_v15  ;;  %v544_v44 = vadd.f32 %v543_v27, %v542_v17 }
 0x10e   : > { %v2531_v45 = vsub.f32 %v339_v23, %v2434_v34  ;;  %v462_v46 = vmul.f32 %v434_v31, %v2510_v22  ;;  %v463_v47 = vmul.f32 %v443_v35, %v2513_v28  ;;  %v464_v48 = vmul.f32 %v452_v36, %v2516_v29 }
 0x10f   : > { %v465_v53 = vmul.f32 %v461_v37, %v2519_v30  ;;  %v470_v54 = vmul.f32 %v2522_v38, %v434_v31  ;;  %v471_v34 = vmul.f32 %v2525_v39, %v443_v35  ;;  %v472_v61 = vmul.f32 %v2528_v40, %v452_v36  ;;  %v1816_v36 = vld [vmem:[%s2382_s8 + $0x140] sm:$0xff] }
 0x110   : > { %3350 = vst [vmem:[#allocation17_spill] sm:$0xff] %v2531_v45  ;;  %v518_v56 = vrot.slane %v517_v41, 1  ;;  %v527_v57 = vrot.slane %v526_v42, 1  ;;  %v536_v58 = vrot.slane %v535_v43, 1  ;;  %v545_v3 = vrot.slane %v544_v44, 1 }
 0x111   : > { %v2551_v6 = vmul.f32 %v2540_v52, %v461_v37  ;;  %v604_v62 = vmul.f32 %v1808_v49, %v2431_v33  ;;  %v605_v63 = vmul.f32 %v1809_v50, %v2431_v33  ;;  %v606_v0 = vmul.f32 %v1810_v51, %v2431_v33  ;;  %v1817_v37 = vld [vmem:[%s2382_s8 + $0x148] sm:$0xff]  ;;  %v1819_v49 = vld [vmem:[%s2382_s8 + $0x158] sm:$0xff]  ;;  %v1820_v50 = vld [vmem:[%s2382_s8 + $0x160] sm:$0xff] }
 0x112   : > { %v519_v1 = vadd.f32 %v518_v56, %v517_v41  ;;  %v528_v8 = vadd.f32 %v527_v57, %v526_v42  ;;  %v537_v9 = vadd.f32 %v536_v58, %v535_v43  ;;  %v546_v10 = vadd.f32 %v545_v3, %v544_v44  ;;  %v1818_v44 = vld [vmem:[%s2382_s8 + $0x150] sm:$0xff]  ;;  %v1821_v58 = vld [vmem:[%s2382_s8 + $0x168] sm:$0xff] }
 0x113   : > { %v607_v11 = vmul.f32 %v1811_v2, %v2431_v33  ;;  %v608_v12 = vmul.f32 %v1812_v55, %v2462_v60  ;;  %v609_v13 = vmul.f32 %v1813_v4, %v2462_v60  ;;  %v610_v14 = vmul.f32 %v1814_v5, %v2462_v60  ;;  %v1822_v3 = vld [vmem:[%s2382_s8 + $0x170] sm:$0xff]  ;;  %v1823_v4 = vld [vmem:[%s2382_s8 + $0x178] sm:$0xff] }
 0x114   : > { %v547_v15 = vmul.f32 %v519_v1, %v2510_v22  ;;  %v548_v17 = vmul.f32 %v528_v8, %v2513_v28  ;;  %v549_v18 = vmul.f32 %v537_v9, %v2516_v29  ;;  %v550_v19 = vmul.f32 %v546_v10, %v2519_v30 }
 0x115   : > { %v567_v21 = vmul.f32 %v2522_v38, %v519_v1  ;;  %v568_v23 = vmul.f32 %v2525_v39, %v528_v8  ;;  %v569_v24 = vmul.f32 %v2528_v40, %v537_v9  ;;  %v2569_v25 = vmul.f32 %v2540_v52, %v546_v10 }
 0x116   : > { %v555_v26 = vrot.slane %v547_v15, 1  ;;  %v556_v27 = vrot.slane %v548_v17, 1  ;;  %v557_v31 = vrot.slane %v549_v18, 1  ;;  %v558_v35 = vrot.slane %v550_v19, 1  ;;  %v1825_v15 = vld [vmem:[%s2382_s8 + $0x188] sm:$0xff]  ;;  %v1827_v17 = vld [vmem:[%s2382_s8 + $0x198] sm:$0xff] }
 0x117   : > { %v575_v41 = vrot.slane %v567_v21, 1  ;;  %v576_v42 = vrot.slane %v568_v23, 1  ;;  %v577_v43 = vrot.slane %v569_v24, 1  ;;  %v611_v51 = vmul.f32 %v1815_v20, %v2462_v60  ;;  %v1828_v20 = vld [vmem:[%s2382_s8 + $0x1a0] sm:$0xff] }
 0x118   : > { %v2577_v2 = vadd.f32 %v555_v26, %v462_v46  ;;  %v2579_v55 = vadd.f32 %v556_v27, %v463_v47  ;;  %v2581_v56 = vadd.f32 %v557_v31, %v464_v48  ;;  %v2587_v5 = vadd.f32 %v558_v35, %v465_v53  ;;  %v1824_v47 = vld [vmem:[%s2382_s8 + $0x180] sm:$0xff]  ;;  %v1829_v27 = vld [vmem:[%s2382_s8 + $0x1a8] sm:$0xff]  ;;  %v1830_v31 = vld [vmem:[%s2382_s8 + $0x1b0] sm:$0xff] }
 0x119   : > { %v2589_v1 = vadd.f32 %v575_v41, %v470_v54  ;;  %v2591_v8 = vadd.f32 %v576_v42, %v471_v34  ;;  %v2593_v46 = vadd.f32 %v577_v43, %v472_v61  ;;  %v612_v9 = vmul.f32 %v1816_v36, %v2429_v32  ;;  %v1826_v54 = vld [vmem:[%s2382_s8 + $0x190] sm:$0xff]  ;;  %v1831_v35 = vld [vmem:[%s2382_s8 + $0x1b8] sm:$0xff]  ;;  %v1832_v36 = vld [vmem:[%s2382_s8 + $0x1c0] sm:$0xff] }
 0x11a   : > { %v613_v48 = vmul.f32 %v1817_v37, %v2429_v32  ;;  %v614_v10 = vmul.f32 %v1818_v44, %v2429_v32  ;;  %v615_v53 = vmul.f32 %v1819_v49, %v2429_v32  ;;  %v616_v34 = vmul.f32 %v1820_v50, %v2460_v59  ;;  %v1836_v44 = vld [vmem:[%s2382_s8 + $0x1e0] sm:$0xff] }
 0x11b   : > { %v617_v61 = vmul.f32 %v1821_v58, %v2460_v59  ;;  %v618_v18 = vmul.f32 %v1822_v3, %v2460_v59  ;;  %v619_v19 = vmul.f32 %v1823_v4, %v2460_v59  ;;  %v620_v21 = vadd.f32 %v608_v12, %v604_v62  ;;  %v1833_v12 = vld [vmem:[%s2382_s8 + $0x1c8] sm:$0xff] }
 0x11c   : > { %v629_v23 = vadd.f32 %v609_v13, %v605_v63  ;;  %v638_v24 = vadd.f32 %v610_v14, %v606_v0  ;;  %v647_v26 = vadd.f32 %v611_v51, %v607_v11  ;;  %v713_v37 = vmul.f32 %v1824_v47, %v2431_v33  ;;  %v1834_v13 = vld [vmem:[%s2382_s8 + $0x1d0] sm:$0xff]  ;;  %v1835_v14 = vld [vmem:[%s2382_s8 + $0x1d8] sm:$0xff] }
 0x11d   : > { %v714_v41 = vmul.f32 %v1825_v15, %v2431_v33  ;;  %v715_v42 = vmul.f32 %v1826_v54, %v2431_v33  ;;  %v716_v43 = vmul.f32 %v1827_v17, %v2431_v33  ;;  %v621_v62 = vadd.f32 %v620_v21, %v612_v9  ;;  %v1839_v15 = vld [vmem:[%s2382_s8 + $0x1f8] sm:$0xff] }
 0x11e   : > { %v630_v63 = vadd.f32 %v629_v23, %v613_v48  ;;  %v639_v0 = vadd.f32 %v638_v24, %v614_v10  ;;  %v648_v11 = vadd.f32 %v647_v26, %v615_v53  ;;  %v717_v49 = vmul.f32 %v1828_v20, %v2462_v60  ;;  %v1837_v48 = vld [vmem:[%s2382_s8 + $0x1e8] sm:$0xff]  ;;  %v1838_v10 = vld [vmem:[%s2382_s8 + $0x1f0] sm:$0xff] }
 0x11f   : > { %v718_v50 = vmul.f32 %v1829_v27, %v2462_v60  ;;  %v719_v51 = vmul.f32 %v1830_v31, %v2462_v60  ;;  %v720_v58 = vmul.f32 %v1831_v35, %v2462_v60  ;;  %v622_v3 = vadd.f32 %v621_v62, %v616_v34 }
 0x120   : > { %v631_v4 = vadd.f32 %v630_v63, %v617_v61  ;;  %v640_v47 = vadd.f32 %v639_v0, %v618_v18  ;;  %v649_v9 = vadd.f32 %v648_v11, %v619_v19  ;;  %v721_v53 = vmul.f32 %v1832_v36, %v2429_v32 }
 0x121   : > { %v722_v54 = vmul.f32 %v1833_v12, %v2429_v32  ;;  %v723_v17 = vmul.f32 %v1834_v13, %v2429_v32  ;;  %v724_v20 = vmul.f32 %v1835_v14, %v2429_v32  ;;  %v623_v21 = vrot.slane %v622_v3, 4 }
 0x122   : > { %v632_v23 = vrot.slane %v631_v4, 4  ;;  %v641_v24 = vrot.slane %v640_v47, 4  ;;  %v650_v26 = vrot.slane %v649_v9, 4  ;;  %v725_v34 = vmul.f32 %v1836_v44, %v2460_v59 }
 0x123   : > { %v726_v61 = vmul.f32 %v1837_v48, %v2460_v59  ;;  %v727_v18 = vmul.f32 %v1838_v10, %v2460_v59  ;;  %v728_v19 = vmul.f32 %v1839_v15, %v2460_v59  ;;  %v624_v27 = vadd.f32 %v623_v21, %v622_v3 }
 0x124   : > { %v633_v31 = vadd.f32 %v632_v23, %v631_v4  ;;  %v642_v35 = vadd.f32 %v641_v24, %v640_v47  ;;  %v651_v36 = vadd.f32 %v650_v26, %v649_v9  ;;  %v729_v62 = vadd.f32 %v717_v49, %v713_v37 }
 0x125   : > { %v738_v63 = vadd.f32 %v718_v50, %v714_v41  ;;  %v747_v0 = vadd.f32 %v719_v51, %v715_v42  ;;  %v756_v11 = vadd.f32 %v720_v58, %v716_v43  ;;  %v625_v12 = vrot.slane %v624_v27, 2 }
 0x126   : > { %v634_v13 = vrot.slane %v633_v31, 2  ;;  %v643_v14 = vrot.slane %v642_v35, 2  ;;  %v652_v7 = vrot.slane %v651_v36, 2  ;;  %v730_v57 = vadd.f32 %v729_v62, %v721_v53 }
 0x127   : > { %v739_v44 = vadd.f32 %v738_v63, %v722_v54  ;;  %v748_v16 = vadd.f32 %v747_v0, %v723_v17  ;;  %v757_v48 = vadd.f32 %v756_v11, %v724_v20  ;;  %v626_v45 = vadd.f32 %v625_v12, %v624_v27 }
 0x128   : > { %v635_v10 = vadd.f32 %v634_v13, %v633_v31  ;;  %v644_v32 = vadd.f32 %v643_v14, %v642_v35  ;;  %v653_v15 = vadd.f32 %v652_v7, %v651_v36  ;;  %v731_v3 = vadd.f32 %v730_v57, %v725_v34  ;;  %v1840_v14 = vld [vmem:[%s2382_s8 + $0x200] sm:$0xff] }
 0x129   : > { %v740_v4 = vadd.f32 %v739_v44, %v726_v61  ;;  %v749_v47 = vadd.f32 %v748_v16, %v727_v18  ;;  %v758_v9 = vadd.f32 %v757_v48, %v728_v19  ;;  %v627_v37 = vrot.slane %v626_v45, 1  ;;  %v1841_v44 = vld [vmem:[%s2382_s8 + $0x208] sm:$0xff]  ;;  %v1842_v48 = vld [vmem:[%s2382_s8 + $0x210] sm:$0xff] }
 0x12a   : > { %v636_v41 = vrot.slane %v635_v10, 1  ;;  %v645_v42 = vrot.slane %v644_v32, 1  ;;  %v654_v43 = vrot.slane %v653_v15, 1  ;;  %v732_v49 = vrot.slane %v731_v3, 4 }
 0x12b   : > { %v741_v50 = vrot.slane %v740_v4, 4  ;;  %v750_v51 = vrot.slane %v749_v47, 4  ;;  %v759_v58 = vrot.slane %v758_v9, 4  ;;  %v628_v53 = vadd.f32 %v627_v37, %v626_v45  ;;  %v1845_v37 = vld [vmem:[%s2382_s8 + $0x228] sm:$0xff] }
 0x12c   : > { %v637_v54 = vadd.f32 %v636_v41, %v635_v10  ;;  %v646_v17 = vadd.f32 %v645_v42, %v644_v32  ;;  %v655_v20 = vadd.f32 %v654_v43, %v653_v15  ;;  %v3351_v21 = vrot.slane %v2569_v25, 1 }
 0x12d   : > { %v733_v57 = vadd.f32 %v732_v49, %v731_v3  ;;  %v742_v23 = vadd.f32 %v741_v50, %v740_v4  ;;  %v751_v16 = vadd.f32 %v750_v51, %v749_v47  ;;  %v656_v24 = vmul.f32 %v628_v53, %v2510_v22  ;;  %v1844_v3 = vld [vmem:[%s2382_s8 + $0x220] sm:$0xff] }
 0x12e   : > { %v586_v7 = vadd.f32 %v3351_v21, %v2551_v6  ;;  %v657_v26 = vmul.f32 %v637_v54, %v2513_v28  ;;  %v658_v34 = vmul.f32 %v646_v17, %v2516_v29  ;;  %v659_v61 = vmul.f32 %v655_v20, %v2519_v30  ;;  %v1852_v21 = vld [vmem:[%s2382_s8 + $0x260] sm:$0xff] }
 0x12f   : > { %v676_v45 = vmul.f32 %v2522_v38, %v628_v53  ;;  %v677_v32 = vmul.f32 %v2525_v39, %v637_v54  ;;  %v678_v25 = vmul.f32 %v2528_v40, %v646_v17  ;;  %v679_v6 = vmul.f32 %v2540_v52, %v655_v20  ;;  %v1848_v53 = vld [vmem:[%s2382_s8 + $0x240] sm:$0xff]  ;;  %v1849_v54 = vld [vmem:[%s2382_s8 + $0x248] sm:$0xff]  ;;  %v1850_v17 = vld [vmem:[%s2382_s8 + $0x250] sm:$0xff] }
 0x130   : > { %v664_v18 = vrot.slane %v656_v24, 2  ;;  %v665_v19 = vrot.slane %v657_v26, 2  ;;  %v666_v27 = vrot.slane %v658_v34, 2  ;;  %v760_v31 = vadd.f32 %v759_v58, %v758_v9  ;;  %v1851_v20 = vld [vmem:[%s2382_s8 + $0x258] sm:$0xff] }
 0x131   : > { %v667_v35 = vrot.slane %v659_v61, 2  ;;  %v684_v36 = vrot.slane %v676_v45, 2  ;;  %v685_v62 = vrot.slane %v677_v32, 2  ;;  %v686_v63 = vrot.slane %v678_v25, 2  ;;  %v1853_v45 = vld [vmem:[%s2382_s8 + $0x268] sm:$0xff]  ;;  %v1854_v32 = vld [vmem:[%s2382_s8 + $0x270] sm:$0xff] }
 0x132   : > { %v2647_v0 = vadd.f32 %v664_v18, %v2577_v2  ;;  %v2650_v11 = vadd.f32 %v665_v19, %v2579_v55  ;;  %v2653_v12 = vadd.f32 %v666_v27, %v2581_v56  ;;  %v687_v13 = vrot.slane %v679_v6, 2  ;;  %v1843_v56 = vld [vmem:[%s2382_s8 + $0x218] sm:$0xff]  ;;  %v3352_v6 = vld [vmem:[#allocation16_spill] sm:$0xff] }
 0x133   : > { %v2659_v10 = vadd.f32 %v667_v35, %v2587_v5  ;;  %v2662_v15 = vadd.f32 %v684_v36, %v2589_v1  ;;  %v2665_v2 = vadd.f32 %v685_v62, %v2591_v8  ;;  %v2668_v55 = vadd.f32 %v686_v63, %v2593_v46  ;;  %v1846_v1 = vld [vmem:[%s2382_s8 + $0x230] sm:$0xff]  ;;  %v1847_v8 = vld [vmem:[%s2382_s8 + $0x238] sm:$0xff] }
 0x134   : > { %v734_v4 = vrot.slane %v733_v57, 2  ;;  %v743_v47 = vrot.slane %v742_v23, 2  ;;  %v752_v9 = vrot.slane %v751_v16, 2  ;;  %v761_v5 = vrot.slane %v760_v31, 2  ;;  %v1855_v63 = vld [vmem:[%s2382_s8 + $0x278] sm:$0xff] }
 0x135   : > { %v2674_v41 = vadd.f32 %v687_v13, %v586_v7  ;;  %v2678_v42 = vmul.f32 %v1840_v14, %v2431_v33  ;;  %v2681_v46 = vmul.f32 %v1841_v44, %v2431_v33  ;;  %v2684_v43 = vmul.f32 %v1842_v48, %v2431_v33 }
 0x136   : > { %v735_v49 = vadd.f32 %v734_v4, %v733_v57  ;;  %v744_v50 = vadd.f32 %v743_v47, %v742_v23  ;;  %v753_v51 = vadd.f32 %v752_v9, %v751_v16  ;;  %v762_v58 = vadd.f32 %v761_v5, %v760_v31 }
 0x137   : > { %v825_v7 = vmul.f32 %v1843_v56, %v2431_v33  ;;  %v826_v24 = vmul.f32 %v1844_v3, %v2462_v60  ;;  %v827_v26 = vmul.f32 %v1845_v37, %v2462_v60  ;;  %v828_v34 = vmul.f32 %v1846_v1, %v2462_v60 }
 0x138   : > { %v736_v57 = vrot.slane %v735_v49, 1  ;;  %v745_v23 = vrot.slane %v744_v50, 1  ;;  %v754_v61 = vrot.slane %v753_v51, 1  ;;  %v763_v16 = vrot.slane %v762_v58, 1 }
 0x139   : > { %v829_v25 = vmul.f32 %v1847_v8, %v2462_v60  ;;  %v830_v18 = vmul.f32 %v1848_v53, %v3352_v6  ;;  %v831_v19 = vmul.f32 %v1849_v54, %v3352_v6  ;;  %v832_v27 = vmul.f32 %v1850_v17, %v3352_v6 }
 0x13a   : > { %v737_v31 = vadd.f32 %v736_v57, %v735_v49  ;;  %v746_v35 = vadd.f32 %v745_v23, %v744_v50  ;;  %v755_v36 = vadd.f32 %v754_v61, %v753_v51  ;;  %v764_v62 = vadd.f32 %v763_v16, %v762_v58  ;;  %v1857_v16 = vld [vmem:[%s2382_s8 + $0x288] sm:$0xff] }
 0x13b   : > { %v833_v13 = vmul.f32 %v1851_v20, %v3352_v6  ;;  %v834_v14 = vmul.f32 %v1852_v21, %v2460_v59  ;;  %v835_v44 = vmul.f32 %v1853_v45, %v2460_v59  ;;  %v836_v48 = vmul.f32 %v1854_v32, %v2460_v59  ;;  %v1856_v20 = vld [vmem:[%s2382_s8 + $0x280] sm:$0xff]  ;;  %v1858_v45 = vld [vmem:[%s2382_s8 + $0x290] sm:$0xff]  ;;  %v1859_v32 = vld [vmem:[%s2382_s8 + $0x298] sm:$0xff] }
 0x13c   : > { %v765_v56 = vmul.f32 %v737_v31, %v2510_v22  ;;  %v766_v3 = vmul.f32 %v746_v35, %v2513_v28  ;;  %v767_v4 = vmul.f32 %v755_v36, %v2516_v29  ;;  %v768_v47 = vmul.f32 %v764_v62, %v2519_v30 }
 0x13d   : > { %v785_v9 = vmul.f32 %v2522_v38, %v737_v31  ;;  %v786_v5 = vmul.f32 %v2525_v39, %v746_v35  ;;  %v787_v37 = vmul.f32 %v2528_v40, %v755_v36  ;;  %v2714_v1 = vmul.f32 %v2540_v52, %v764_v62 }
 0x13e   : > { %v773_v8 = vrot.slane %v765_v56, 3  ;;  %v774_v49 = vrot.slane %v766_v3, 3  ;;  %v775_v50 = vrot.slane %v767_v4, 3  ;;  %v837_v51 = vmul.f32 %v1855_v63, %v2460_v59  ;;  %v1862_v56 = vld [vmem:[%s2382_s8 + $0x2b0] sm:$0xff]  ;;  %v1863_v3 = vld [vmem:[%s2382_s8 + $0x2b8] sm:$0xff] }
 0x13f   : > { %v776_v58 = vrot.slane %v768_v47, 3  ;;  %v793_v53 = vrot.slane %v785_v9, 3  ;;  %v794_v54 = vrot.slane %v786_v5, 3  ;;  %v795_v17 = vrot.slane %v787_v37, 3  ;;  %v1868_v9 = vld [vmem:[%s2382_s8 + $0x2e0] sm:$0xff] }
 0x140   : > { %v2719_v21 = vadd.f32 %v773_v8, %v2647_v0  ;;  %v2722_v57 = vadd.f32 %v774_v49, %v2650_v11  ;;  %v2725_v23 = vadd.f32 %v775_v50, %v2653_v12  ;;  %v1860_v12 = vld [vmem:[%s2382_s8 + $0x2a0] sm:$0xff]  ;;  %v838_v36 = vadd.f32 %v826_v24, %v2678_v42 }
 0x141   : > { %v2732_v31 = vadd.f32 %v776_v58, %v2659_v10  ;;  %v2735_v0 = vadd.f32 %v793_v53, %v2662_v15  ;;  %v2738_v11 = vadd.f32 %v794_v54, %v2665_v2  ;;  %v2741_v35 = vadd.f32 %v795_v17, %v2668_v55  ;;  %v1861_v15 = vld [vmem:[%s2382_s8 + $0x2a8] sm:$0xff]  ;;  %v1864_v2 = vld [vmem:[%s2382_s8 + $0x2c0] sm:$0xff]  ;;  %v1871_v54 = vld [vmem:[%s2382_s8 + $0x2f8] sm:$0xff] }
 0x142   : > { %v847_v62 = vadd.f32 %v827_v26, %v2681_v46  ;;  %v856_v63 = vadd.f32 %v828_v34, %v2684_v43  ;;  %v865_v10 = vadd.f32 %v829_v25, %v825_v7  ;;  %v931_v4 = vmul.f32 %v1856_v20, %v2431_v33  ;;  %v1865_v26 = vld [vmem:[%s2382_s8 + $0x2c8] sm:$0xff]  ;;  %v1866_v34 = vld [vmem:[%s2382_s8 + $0x2d0] sm:$0xff]  ;;  %v1867_v25 = vld [vmem:[%s2382_s8 + $0x2d8] sm:$0xff] }
 0x143   : > { %v932_v55 = vmul.f32 %v1857_v16, %v2431_v33  ;;  %v933_v47 = vmul.f32 %v1858_v45, %v2431_v33  ;;  %v934_v42 = vmul.f32 %v1859_v32, %v2431_v33  ;;  %v839_v24 = vadd.f32 %v838_v36, %v830_v18  ;;  %v1869_v53 = vld [vmem:[%s2382_s8 + $0x2e8] sm:$0xff] }
 0x144   : > { %v848_v46 = vadd.f32 %v847_v62, %v831_v19  ;;  %v857_v43 = vadd.f32 %v856_v63, %v832_v27  ;;  %v866_v7 = vadd.f32 %v865_v10, %v833_v13  ;;  %v935_v5 = vmul.f32 %v1860_v12, %v2462_v60  ;;  %v1870_v27 = vld [vmem:[%s2382_s8 + $0x2f0] sm:$0xff] }
 0x145   : > { %v936_v37 = vmul.f32 %v1861_v15, %v2462_v60  ;;  %v937_v8 = vmul.f32 %v1862_v56, %v2462_v60  ;;  %v938_v49 = vmul.f32 %v1863_v3, %v2462_v60  ;;  %v840_v50 = vadd.f32 %v839_v24, %v834_v14 }
 0x146   : > { %v849_v18 = vadd.f32 %v848_v46, %v835_v44  ;;  %v858_v58 = vadd.f32 %v857_v43, %v836_v48  ;;  %v867_v19 = vadd.f32 %v866_v7, %v837_v51  ;;  %v939_v13 = vmul.f32 %v1864_v2, %v3352_v6 }
 0x147   : > { %v940_v17 = vmul.f32 %v1865_v26, %v3352_v6  ;;  %v941_v20 = vmul.f32 %v1866_v34, %v3352_v6  ;;  %v942_v16 = vmul.f32 %v1867_v25, %v3352_v6  ;;  %v841_v45 = vrot.slane %v840_v50, 4 }
 0x148   : > { %v850_v32 = vrot.slane %v849_v18, 4  ;;  %v859_v12 = vrot.slane %v858_v58, 4  ;;  %v868_v36 = vrot.slane %v867_v19, 4  ;;  %v943_v14 = vmul.f32 %v1868_v9, %v2460_v59 }
 0x149   : > { %v944_v44 = vmul.f32 %v1869_v53, %v2460_v59  ;;  %v945_v48 = vmul.f32 %v1870_v27, %v2460_v59  ;;  %v946_v51 = vmul.f32 %v1871_v54, %v2460_v59  ;;  %v842_v62 = vadd.f32 %v841_v45, %v840_v50 }
 0x14a   : > { %v851_v63 = vadd.f32 %v850_v32, %v849_v18  ;;  %v860_v10 = vadd.f32 %v859_v12, %v858_v58  ;;  %v869_v15 = vadd.f32 %v868_v36, %v867_v19  ;;  %v947_v56 = vadd.f32 %v935_v5, %v931_v4 }
 0x14b   : > { %v956_v3 = vadd.f32 %v936_v37, %v932_v55  ;;  %v965_v2 = vadd.f32 %v937_v8, %v933_v47  ;;  %v974_v24 = vadd.f32 %v938_v49, %v934_v42  ;;  %v843_v46 = vrot.slane %v842_v62, 2 }
 0x14c   : > { %v852_v43 = vrot.slane %v851_v63, 2  ;;  %v861_v7 = vrot.slane %v860_v10, 2  ;;  %v870_v26 = vrot.slane %v869_v15, 2  ;;  %v948_v34 = vadd.f32 %v947_v56, %v939_v13 }
 0x14d   : > { %v957_v25 = vadd.f32 %v956_v3, %v940_v17  ;;  %v966_v9 = vadd.f32 %v965_v2, %v941_v20  ;;  %v975_v53 = vadd.f32 %v974_v24, %v942_v16  ;;  %v844_v61 = vadd.f32 %v843_v46, %v842_v62 }
 0x14e   : > { %v853_v27 = vadd.f32 %v852_v43, %v851_v63  ;;  %v862_v6 = vadd.f32 %v861_v7, %v860_v10  ;;  %v871_v54 = vadd.f32 %v870_v26, %v869_v15  ;;  %v949_v50 = vadd.f32 %v948_v34, %v943_v14 }
 0x14f   : > { %v958_v18 = vadd.f32 %v957_v25, %v944_v44  ;;  %v967_v58 = vadd.f32 %v966_v9, %v945_v48  ;;  %v976_v19 = vadd.f32 %v975_v53, %v946_v51  ;;  %v845_v4 = vrot.slane %v844_v61, 1  ;;  %v1872_v25 = vld [vmem:[%s2382_s8 + $0x300] sm:$0xff]  ;;  %v1873_v9 = vld [vmem:[%s2382_s8 + $0x308] sm:$0xff]  ;;  %v1874_v53 = vld [vmem:[%s2382_s8 + $0x310] sm:$0xff] }
 0x150   : > { %v854_v55 = vrot.slane %v853_v27, 1  ;;  %v863_v47 = vrot.slane %v862_v6, 1  ;;  %v872_v42 = vrot.slane %v871_v54, 1  ;;  %v950_v5 = vrot.slane %v949_v50, 4 }
 0x151   : > { %v959_v37 = vrot.slane %v958_v18, 4  ;;  %v968_v8 = vrot.slane %v967_v58, 4  ;;  %v977_v49 = vrot.slane %v976_v19, 4  ;;  %v846_v13 = vadd.f32 %v845_v4, %v844_v61  ;;  %v1877_v4 = vld [vmem:[%s2382_s8 + $0x328] sm:$0xff] }
 0x152   : > { %v855_v17 = vadd.f32 %v854_v55, %v853_v27  ;;  %v864_v20 = vadd.f32 %v863_v47, %v862_v6  ;;  %v873_v16 = vadd.f32 %v872_v42, %v871_v54  ;;  %v3353_v45 = vrot.slane %v2714_v1, 3 }
 0x153   : > { %v951_v12 = vadd.f32 %v950_v5, %v949_v50  ;;  %v960_v36 = vadd.f32 %v959_v37, %v958_v18  ;;  %v969_v14 = vadd.f32 %v968_v8, %v967_v58  ;;  %v874_v44 = vmul.f32 %v846_v13, %v2510_v22  ;;  %v1876_v50 = vld [vmem:[%s2382_s8 + $0x320] sm:$0xff] }
 0x154   : > { %v804_v32 = vadd.f32 %v3353_v45, %v2674_v41  ;;  %v875_v48 = vmul.f32 %v855_v17, %v2513_v28  ;;  %v876_v51 = vmul.f32 %v864_v20, %v2516_v29  ;;  %v877_v62 = vmul.f32 %v873_v16, %v2519_v30  ;;  %v1884_v45 = vld [vmem:[%s2382_s8 + $0x360] sm:$0xff] }
 0x155   : > { %v894_v61 = vmul.f32 %v2522_v38, %v846_v13  ;;  %v895_v6 = vmul.f32 %v2525_v39, %v855_v17  ;;  %v896_v1 = vmul.f32 %v2528_v40, %v864_v20  ;;  %v897_v41 = vmul.f32 %v2540_v52, %v873_v16  ;;  %v1880_v13 = vld [vmem:[%s2382_s8 + $0x340] sm:$0xff]  ;;  %v1881_v17 = vld [vmem:[%s2382_s8 + $0x348] sm:$0xff]  ;;  %v1882_v20 = vld [vmem:[%s2382_s8 + $0x350] sm:$0xff] }
 0x156   : > { %v882_v63 = vrot.slane %v874_v44, 4  ;;  %v883_v10 = vrot.slane %v875_v48, 4  ;;  %v884_v15 = vrot.slane %v876_v51, 4  ;;  %v978_v56 = vadd.f32 %v977_v49, %v976_v19  ;;  %v1883_v16 = vld [vmem:[%s2382_s8 + $0x358] sm:$0xff] }
 0x157   : > { %v885_v3 = vrot.slane %v877_v62, 4  ;;  %v902_v2 = vrot.slane %v894_v61, 4  ;;  %v903_v24 = vrot.slane %v895_v6, 4  ;;  %v904_v46 = vrot.slane %v896_v1, 4  ;;  %v1885_v61 = vld [vmem:[%s2382_s8 + $0x368] sm:$0xff]  ;;  %v1886_v6 = vld [vmem:[%s2382_s8 + $0x370] sm:$0xff] }
 0x158   : > { %v2786_v43 = vadd.f32 %v882_v63, %v2719_v21  ;;  %v2789_v7 = vadd.f32 %v883_v10, %v2722_v57  ;;  %v2792_v26 = vadd.f32 %v884_v15, %v2725_v23  ;;  %v905_v34 = vrot.slane %v897_v41, 4  ;;  %v1875_v23 = vld [vmem:[%s2382_s8 + $0x318] sm:$0xff]  ;;  %v3354_v41 = vld [vmem:[#allocation16_spill] sm:$0xff] }
 0x159   : > { %v2798_v27 = vadd.f32 %v885_v3, %v2732_v31  ;;  %v2801_v54 = vadd.f32 %v902_v2, %v2735_v0  ;;  %v2804_v21 = vadd.f32 %v903_v24, %v2738_v11  ;;  %v2807_v57 = vadd.f32 %v904_v46, %v2741_v35  ;;  %v1878_v0 = vld [vmem:[%s2382_s8 + $0x330] sm:$0xff]  ;;  %v1879_v11 = vld [vmem:[%s2382_s8 + $0x338] sm:$0xff] }
 0x15a   : > { %v952_v18 = vrot.slane %v951_v12, 2  ;;  %v961_v58 = vrot.slane %v960_v36, 2  ;;  %v970_v19 = vrot.slane %v969_v14, 2  ;;  %v979_v31 = vrot.slane %v978_v56, 2  ;;  %v1887_v46 = vld [vmem:[%s2382_s8 + $0x378] sm:$0xff] }
 0x15b   : > { %v2813_v55 = vadd.f32 %v905_v34, %v804_v32  ;;  %v2817_v47 = vmul.f32 %v1872_v25, %v2431_v33  ;;  %v2820_v35 = vmul.f32 %v1873_v9, %v2431_v33  ;;  %v2823_v42 = vmul.f32 %v1874_v53, %v2431_v33 }
 0x15c   : > { %v953_v5 = vadd.f32 %v952_v18, %v951_v12  ;;  %v962_v37 = vadd.f32 %v961_v58, %v960_v36  ;;  %v971_v8 = vadd.f32 %v970_v19, %v969_v14  ;;  %v980_v49 = vadd.f32 %v979_v31, %v978_v56 }
 0x15d   : > { %v1043_v32 = vmul.f32 %v1875_v23, %v2431_v33  ;;  %v1044_v44 = vmul.f32 %v1876_v50, %v2462_v60  ;;  %v1045_v48 = vmul.f32 %v1877_v4, %v2462_v60  ;;  %v1046_v51 = vmul.f32 %v1878_v0, %v2462_v60 }
 0x15e   : > { %v954_v12 = vrot.slane %v953_v5, 1  ;;  %v963_v36 = vrot.slane %v962_v37, 1  ;;  %v972_v62 = vrot.slane %v971_v8, 1  ;;  %v981_v14 = vrot.slane %v980_v49, 1 }
 0x15f   : > { %v1047_v1 = vmul.f32 %v1879_v11, %v2462_v60  ;;  %v1048_v63 = vmul.f32 %v1880_v13, %v3354_v41  ;;  %v1049_v10 = vmul.f32 %v1881_v17, %v3354_v41  ;;  %v1050_v15 = vmul.f32 %v1882_v20, %v3354_v41  ;;  %v1889_v13 = vld [vmem:[%s2382_s8 + $0x388] sm:$0xff]  ;;  %v1890_v17 = vld [vmem:[%s2382_s8 + $0x390] sm:$0xff]  ;;  %v1891_v20 = vld [vmem:[%s2382_s8 + $0x398] sm:$0xff] }
 0x160   : > { %v955_v56 = vadd.f32 %v954_v12, %v953_v5  ;;  %v964_v3 = vadd.f32 %v963_v36, %v962_v37  ;;  %v973_v2 = vadd.f32 %v972_v62, %v971_v8  ;;  %v982_v24 = vadd.f32 %v981_v14, %v980_v49  ;;  %v1888_v8 = vld [vmem:[%s2382_s8 + $0x380] sm:$0xff]  ;;  %v1894_v14 = vld [vmem:[%s2382_s8 + $0x3b0] sm:$0xff] }
 0x161   : > { %v1051_v34 = vmul.f32 %v1883_v16, %v3354_v41  ;;  %v1052_v25 = vmul.f32 %v1884_v45, %v2460_v59  ;;  %v1053_v9 = vmul.f32 %v1885_v61, %v2460_v59  ;;  %v1054_v53 = vmul.f32 %v1886_v6, %v2460_v59  ;;  %v1895_v61 = vld [vmem:[%s2382_s8 + $0x3b8] sm:$0xff] }
 0x162   : > { %v983_v23 = vmul.f32 %v955_v56, %v2510_v22  ;;  %v984_v50 = vmul.f32 %v964_v3, %v2513_v28  ;;  %v985_v18 = vmul.f32 %v973_v2, %v2516_v29  ;;  %v986_v58 = vmul.f32 %v982_v24, %v2519_v30 }
 0x163   : > { %v1003_v19 = vmul.f32 %v2522_v38, %v955_v56  ;;  %v1004_v31 = vmul.f32 %v2525_v39, %v964_v3  ;;  %v1005_v4 = vmul.f32 %v2528_v40, %v973_v2  ;;  %v2853_v0 = vmul.f32 %v2540_v52, %v982_v24  ;;  %v1900_v3 = vld [vmem:[%s2382_s8 + $0x3e0] sm:$0xff] }
 0x164   : > { %v991_v22 = vrot.slane %v983_v23, 5  ;;  %v992_v11 = vrot.slane %v984_v50, 5  ;;  %v993_v5 = vrot.slane %v985_v18, 5  ;;  %v1055_v28 = vmul.f32 %v1887_v46, %v2460_v59  ;;  %v1901_v18 = vld [vmem:[%s2382_s8 + $0x3e8] sm:$0xff] }
 0x165   : > { %v994_v29 = vrot.slane %v986_v58, 5  ;;  %v1011_v30 = vrot.slane %v1003_v19, 5  ;;  %v1012_v37 = vrot.slane %v1004_v31, 5  ;;  %v1013_v38 = vrot.slane %v1005_v4, 5  ;;  %v1903_v58 = vld [vmem:[%s2382_s8 + $0x3f8] sm:$0xff] }
 0x166   : > { %v2858_v39 = vadd.f32 %v991_v22, %v2786_v43  ;;  %v2861_v40 = vadd.f32 %v992_v11, %v2789_v7  ;;  %v2864_v52 = vadd.f32 %v993_v5, %v2792_v26  ;;  %v1014_v49 = vrot.slane %v2853_v0, 5  ;;  %v1892_v26 = vld [vmem:[%s2382_s8 + $0x3a0] sm:$0xff]  ;;  %v2931_v0 = vld [vmem:[%s2390_s7 + $0x18] sm:$0xff] }
 0x167   : > { %v2871_v16 = vadd.f32 %v994_v29, %v2798_v27  ;;  %v2874_v43 = vadd.f32 %v1011_v30, %v2801_v54  ;;  %v2877_v7 = vadd.f32 %v1012_v37, %v2804_v21  ;;  %v2880_v45 = vadd.f32 %v1013_v38, %v2807_v57  ;;  %v1893_v54 = vld [vmem:[%s2382_s8 + $0x3a8] sm:$0xff]  ;;  %v1896_v21 = vld [vmem:[%s2382_s8 + $0x3c0] sm:$0xff] }
 0x168   : > { %v1056_v12 = vadd.f32 %v1044_v44, %v2817_v47  ;;  %v1065_v36 = vadd.f32 %v1045_v48, %v2820_v35  ;;  %v1074_v62 = vadd.f32 %v1046_v51, %v2823_v42  ;;  %v1083_v27 = vadd.f32 %v1047_v1, %v1043_v32  ;;  %v1897_v48 = vld [vmem:[%s2382_s8 + $0x3c8] sm:$0xff]  ;;  %v1898_v51 = vld [vmem:[%s2382_s8 + $0x3d0] sm:$0xff]  ;;  %v1899_v1 = vld [vmem:[%s2382_s8 + $0x3d8] sm:$0xff] }
 0x169   : > { %v1149_v6 = vmul.f32 %v1888_v8, %v2431_v33  ;;  %v1150_v57 = vmul.f32 %v1889_v13, %v2431_v33  ;;  %v1151_v56 = vmul.f32 %v1890_v17, %v2431_v33  ;;  %v1152_v47 = vmul.f32 %v1891_v20, %v2431_v33 }
 0x16a   : > { %v1057_v44 = vadd.f32 %v1056_v12, %v1048_v63  ;;  %v1066_v35 = vadd.f32 %v1065_v36, %v1049_v10  ;;  %v1075_v42 = vadd.f32 %v1074_v62, %v1050_v15  ;;  %v1084_v32 = vadd.f32 %v1083_v27, %v1051_v34  ;;  %v1902_v15 = vld [vmem:[%s2382_s8 + $0x3f0] sm:$0xff]  ;;  %s3044_s8 = sld [smem:[#allocation2 + $0x1]] }
 0x16b   : > { %v1153_v2 = vmul.f32 %v1892_v26, %v2462_v60  ;;  %v1154_v24 = vmul.f32 %v1893_v54, %v2462_v60  ;;  %v1155_v46 = vmul.f32 %v1894_v14, %v2462_v60  ;;  %v1156_v23 = vmul.f32 %v1895_v61, %v2462_v60 }
 0x16c   : > { %v1058_v33 = vadd.f32 %v1057_v44, %v1052_v25  ;;  %v1067_v63 = vadd.f32 %v1066_v35, %v1053_v9  ;;  %v1076_v50 = vadd.f32 %v1075_v42, %v1054_v53  ;;  %v1085_v10 = vadd.f32 %v1084_v32, %v1055_v28 }
 0x16d   : > { %v1157_v34 = vmul.f32 %v1896_v21, %v3354_v41  ;;  %v1158_v19 = vmul.f32 %v1897_v48, %v3354_v41  ;;  %v1159_v31 = vmul.f32 %v1898_v51, %v3354_v41  ;;  %v1160_v4 = vmul.f32 %v1899_v1, %v3354_v41 }
 0x16e   : > { %v1059_v22 = vrot.slane %v1058_v33, 4  ;;  %v1068_v11 = vrot.slane %v1067_v63, 4  ;;  %v1077_v5 = vrot.slane %v1076_v50, 4  ;;  %v1086_v29 = vrot.slane %v1085_v10, 4 }
 0x16f   : > { %v1161_v60 = vmul.f32 %v1900_v3, %v2460_v59  ;;  %v1162_v25 = vmul.f32 %v1901_v18, %v2460_v59  ;;  %v1163_v9 = vmul.f32 %v1902_v15, %v2460_v59  ;;  %v1164_v53 = vmul.f32 %v1903_v58, %v2460_v59  ;;  %v2919_v15 = vld [vmem:[%s2390_s7] sm:$0xff] }
 0x170   : > { %v1060_v28 = vadd.f32 %v1059_v22, %v1058_v33  ;;  %v1069_v30 = vadd.f32 %v1068_v11, %v1067_v63  ;;  %v1078_v37 = vadd.f32 %v1077_v5, %v1076_v50  ;;  %v1087_v38 = vadd.f32 %v1086_v29, %v1085_v10  ;;  %v2939_v11 = vld [vmem:[%s2390_s7 + $0x28] sm:$0xff]  ;;  %v2943_v29 = vld [vmem:[%s2390_s7 + $0x30] sm:$0xff]  ;;  %s1381_s11 = sadd.f32 %s3044_s8, %s3012_s12  ;;  %s1383_s15 = smul.f32 %s3044_s8, %s1382_s2 }
 0x171   : > { %v1165_v8 = vadd.f32 %v1153_v2, %v1149_v6  ;;  %v1174_v13 = vadd.f32 %v1154_v24, %v1150_v57  ;;  %v1183_v17 = vadd.f32 %v1155_v46, %v1151_v56  ;;  %v1192_v41 = vadd.f32 %v1156_v23, %v1152_v47  ;;  %s2089_s12 = sshll.u32 %s2169_s22, 4  ;;  %s2090_s12 = int_to_ptr.vmem [resolvable:$false] %s2089_s12 }
 0x172   : > { %v1061_v20 = vrot.slane %v1060_v28, 2  ;;  %v1070_v26 = vrot.slane %v1069_v30, 2  ;;  %v1079_v12 = vrot.slane %v1078_v37, 2  ;;  %v1088_v36 = vrot.slane %v1087_v38, 2  ;;  %p2092_p7 = scmp.lt.s32.totalorder %s3273_s26, %s2090_s12 }
 0x173   : > { %v1166_v62 = vadd.f32 %v1165_v8, %v1157_v34  ;;  %v1175_v27 = vadd.f32 %v1174_v13, %v1158_v19  ;;  %v1184_v54 = vadd.f32 %v1183_v17, %v1159_v31  ;;  %v1193_v14 = vadd.f32 %v1192_v41, %v1160_v4  ;;  %v2923_v34 = vld [vmem:[%s2390_s7 + $0x8] sm:$0xff]  ;;  %v2927_v31 = vld [vmem:[%s2390_s7 + $0x10] sm:$0xff] }
 0x174   : > { %v1062_v61 = vadd.f32 %v1061_v20, %v1060_v28  ;;  %v1071_v21 = vadd.f32 %v1070_v26, %v1069_v30  ;;  %v1080_v44 = vadd.f32 %v1079_v12, %v1078_v37  ;;  %v1089_v59 = vadd.f32 %v1088_v36, %v1087_v38 }
 0x175   : > { %v1167_v35 = vadd.f32 %v1166_v62, %v1161_v60  ;;  %v1176_v42 = vadd.f32 %v1175_v27, %v1162_v25  ;;  %v1185_v32 = vadd.f32 %v1184_v54, %v1163_v9  ;;  %v1194_v48 = vadd.f32 %v1193_v14, %v1164_v53  ;;  %v2947_v25 = vld [vmem:[%s2390_s7 + $0x38] sm:$0xff] }
 0x176   : > { %v1063_v6 = vrot.slane %v1062_v61, 1  ;;  %v1072_v57 = vrot.slane %v1071_v21, 1  ;;  %v1081_v56 = vrot.slane %v1080_v44, 1  ;;  %v1090_v47 = vrot.slane %v1089_v59, 1 }
 0x177   : > { %v1168_v51 = vrot.slane %v1167_v35, 4  ;;  %v1177_v1 = vrot.slane %v1176_v42, 4  ;;  %v1186_v3 = vrot.slane %v1185_v32, 4  ;;  %v1195_v2 = vrot.slane %v1194_v48, 4 }
 0x178   : > { %v1064_v24 = vadd.f32 %v1063_v6, %v1062_v61  ;;  %v1073_v46 = vadd.f32 %v1072_v57, %v1071_v21  ;;  %v1082_v23 = vadd.f32 %v1081_v56, %v1080_v44  ;;  %v1091_v33 = vadd.f32 %v1090_v47, %v1089_v59 }
 0x179   : > { %v2916_v63 = vadd.f32 %v1014_v49, %v2813_v55  ;;  %v1169_v50 = vadd.f32 %v1168_v51, %v1167_v35  ;;  %v1178_v10 = vadd.f32 %v1177_v1, %v1176_v42  ;;  %v1187_v18 = vadd.f32 %v1186_v3, %v1185_v32  ;;  %v2935_v49 = vld [vmem:[%s2390_s7 + $0x20] sm:$0xff] }
 0x17a   : > { %v1092_v58 = vmul.f32 %v2919_v15, %v1064_v24  ;;  %v1093_v19 = vmul.f32 %v2923_v34, %v1073_v46  ;;  %v1094_v4 = vmul.f32 %v2927_v31, %v1082_v23  ;;  %v1095_v55 = vmul.f32 %v2931_v0, %v1091_v33 }
 0x17b   : > { %v1112_v22 = vmul.f32 %v2935_v49, %v1064_v24  ;;  %v1113_v5 = vmul.f32 %v2939_v11, %v1073_v46  ;;  %v1114_v60 = vmul.f32 %v2943_v29, %v1082_v23  ;;  %v1115_v9 = vmul.f32 %v2947_v25, %v1091_v33 }
 0x17c   : > { %v1100_v53 = vrot.slane %v1092_v58, 6  ;;  %v1101_v28 = vrot.slane %v1093_v19, 6  ;;  %v1102_v30 = vrot.slane %v1094_v4, 6  ;;  %v1196_v37 = vadd.f32 %v1195_v2, %v1194_v48 }
 0x17d   : > { %v1103_v38 = vrot.slane %v1095_v55, 6  ;;  %v1120_v8 = vrot.slane %v1112_v22, 6  ;;  %v1121_v13 = vrot.slane %v1113_v5, 6  ;;  %v1122_v17 = vrot.slane %v1114_v60, 6 }
 0x17e   : > { %v1108_v41 = vadd.f32 %v1100_v53, %v2858_v39  ;;  %v1109_v20 = vadd.f32 %v1101_v28, %v2861_v40  ;;  %v1110_v26 = vadd.f32 %v1102_v30, %v2864_v52  ;;  %v1123_v12 = vrot.slane %v1115_v9, 6 }
 0x17f   : > { %v1111_v36 = vadd.f32 %v1103_v38, %v2871_v16  ;;  %v1128_v62 = vadd.f32 %v1120_v8, %v2874_v43  ;;  %v1129_v27 = vadd.f32 %v1121_v13, %v2877_v7  ;;  %v1130_v54 = vadd.f32 %v1122_v17, %v2880_v45 }
 0x180   : > { %v1170_v14 = vrot.slane %v1169_v50, 2  ;;  %v1179_v61 = vrot.slane %v1178_v10, 2  ;;  %v1188_v21 = vrot.slane %v1187_v18, 2  ;;  %v1197_v44 = vrot.slane %v1196_v37, 2 }
 0x181   : > { %v1241_v39 = vmul.f32 %v2919_v15, %v2919_v15  ;;  %v1242_v40 = vmul.f32 %v2923_v34, %v2923_v34  ;;  %v1243_v52 = vmul.f32 %v2927_v31, %v2927_v31  ;;  %v1244_v16 = vmul.f32 %v2931_v0, %v2931_v0 }
 0x182   : > { %v1171_v43 = vadd.f32 %v1170_v14, %v1169_v50  ;;  %v1180_v7 = vadd.f32 %v1179_v61, %v1178_v10  ;;  %v1189_v59 = vadd.f32 %v1188_v21, %v1187_v18  ;;  %v1198_v45 = vadd.f32 %v1197_v44, %v1196_v37 }
 0x183   : > { %v1245_v35 = vrot.slane %v1241_v39, 4  ;;  %v1251_v42 = vrot.slane %v1242_v40, 4  ;;  %v1257_v32 = vrot.slane %v1243_v52, 4  ;;  %v1263_v48 = vrot.slane %v1244_v16, 4 }
 0x184   : > { %v1172_v6 = vrot.slane %v1171_v43, 1  ;;  %v1181_v57 = vrot.slane %v1180_v7, 1  ;;  %v1190_v56 = vrot.slane %v1189_v59, 1  ;;  %v1199_v47 = vrot.slane %v1198_v45, 1 }
 0x185   : > { %v1246_v51 = vadd.f32 %v1245_v35, %v1241_v39  ;;  %v1252_v1 = vadd.f32 %v1251_v42, %v1242_v40  ;;  %v1258_v3 = vadd.f32 %v1257_v32, %v1243_v52  ;;  %v1264_v2 = vadd.f32 %v1263_v48, %v1244_v16 }
 0x186   : > { %v1173_v24 = vadd.f32 %v1172_v6, %v1171_v43  ;;  %v1182_v46 = vadd.f32 %v1181_v57, %v1180_v7  ;;  %v1191_v23 = vadd.f32 %v1190_v56, %v1189_v59  ;;  %v1200_v33 = vadd.f32 %v1199_v47, %v1198_v45 }
 0x187   : > { %v1131_v50 = vadd.f32 %v1123_v12, %v2916_v63  ;;  %v1247_v10 = vrot.slane %v1246_v51, 2  ;;  %v1253_v18 = vrot.slane %v1252_v1, 2  ;;  %v1259_v58 = vrot.slane %v1258_v3, 2 }
 0x188   : > { %v1201_v19 = vmul.f32 %v2919_v15, %v1173_v24  ;;  %v1202_v4 = vmul.f32 %v2923_v34, %v1182_v46  ;;  %v1203_v55 = vmul.f32 %v2927_v31, %v1191_v23  ;;  %v1204_v22 = vmul.f32 %v2931_v0, %v1200_v33 }
 0x189   : > { %v1221_v5 = vmul.f32 %v2935_v49, %v1173_v24  ;;  %v1222_v60 = vmul.f32 %v2939_v11, %v1182_v46  ;;  %v1223_v9 = vmul.f32 %v2943_v29, %v1191_v23  ;;  %v1224_v53 = vmul.f32 %v2947_v25, %v1200_v33 }
 0x18a   : > { %v1209_v63 = vrot.slane %v1201_v19, 7  ;;  %v1210_v28 = vrot.slane %v1202_v4, 7  ;;  %v1211_v30 = vrot.slane %v1203_v55, 7  ;;  %v1265_v37 = vrot.slane %v1264_v2, 2 }
 0x18b   : > { %v1212_v38 = vrot.slane %v1204_v22, 7  ;;  %v1229_v8 = vrot.slane %v1221_v5, 7  ;;  %v1230_v13 = vrot.slane %v1222_v60, 7  ;;  %v1231_v17 = vrot.slane %v1223_v9, 7 }
 0x18c   : > { %v2974_v12 = vadd.f32 %v1209_v63, %v1108_v41  ;;  %v2976_v14 = vadd.f32 %v1210_v28, %v1109_v20  ;;  %v2978_v61 = vadd.f32 %v1211_v30, %v1110_v26  ;;  %v1232_v21 = vrot.slane %v1224_v53, 7 }
 0x18d   : > { %v2980_v44 = vadd.f32 %v1212_v38, %v1111_v36  ;;  %v2982_v39 = vadd.f32 %v1229_v8, %v1128_v62  ;;  %v2984_v40 = vadd.f32 %v1230_v13, %v1129_v27  ;;  %v2986_v52 = vadd.f32 %v1231_v17, %v1130_v54 }
 0x18e   : > { %v1248_v16 = vadd.f32 %v1247_v10, %v1246_v51  ;;  %v1254_v43 = vadd.f32 %v1253_v18, %v1252_v1  ;;  %v1260_v7 = vadd.f32 %v1259_v58, %v1258_v3  ;;  %v1266_v59 = vadd.f32 %v1265_v37, %v1264_v2 }
 0x18f   : > { %v1269_v41 = vmul.f32 %v2935_v49, %v2919_v15  ;;  %v1270_v20 = vmul.f32 %v2939_v11, %v2923_v34  ;;  %v1271_v26 = vmul.f32 %v2943_v29, %v2927_v31  ;;  %v1272_v36 = vmul.f32 %v2947_v25, %v2931_v0 }
 0x190   : > { %v2996_v62 = vadd.f32 %v1232_v21, %v1131_v50  ;;  %v1249_v27 = vrot.slane %v1248_v16, 1  ;;  %v1255_v54 = vrot.slane %v1254_v43, 1  ;;  %v1261_v45 = vrot.slane %v1260_v7, 1 }
 0x191   : > { %v1273_v35 = vrot.slane %v1269_v41, 4  ;;  %v1279_v42 = vrot.slane %v1270_v20, 4  ;;  %v1285_v32 = vrot.slane %v1271_v26, 4  ;;  %v1291_v48 = vrot.slane %v1272_v36, 4 }
 0x192   : > { %v2998_v6 = vadd.f32 %v1249_v27, %v1248_v16  ;;  %v3000_v57 = vadd.f32 %v1255_v54, %v1254_v43  ;;  %v3002_v56 = vadd.f32 %v1261_v45, %v1260_v7  ;;  %v1267_v47 = vrot.slane %v1266_v59, 1 }
 0x193   : > { %v1274_v51 = vadd.f32 %v1273_v35, %v1269_v41  ;;  %v1280_v1 = vadd.f32 %v1279_v42, %v1270_v20  ;;  %v1286_v3 = vadd.f32 %v1285_v32, %v1271_v26  ;;  %v1292_v2 = vadd.f32 %v1291_v48, %v1272_v36  ;;  %v3023_v42 = vld [vmem:[%s2390_s7 + $0x40] sm:$0xff]  ;;  %v3028_v48 = vld [vmem:[%s2390_s7 + $0x48] sm:$0xff] }
 0x194   : > { %v1297_v24 = vmul.f32 %v2935_v49, %v2935_v49  ;;  %v1298_v46 = vmul.f32 %v2939_v11, %v2939_v11  ;;  %v1299_v23 = vmul.f32 %v2943_v29, %v2943_v29  ;;  %v1300_v33 = vmul.f32 %v2947_v25, %v2947_v25 }
 0x195   : > { %v1275_v50 = vrot.slane %v1274_v51, 2  ;;  %v1281_v10 = vrot.slane %v1280_v1, 2  ;;  %v1287_v18 = vrot.slane %v1286_v3, 2  ;;  %v1293_v58 = vrot.slane %v1292_v2, 2 }
 0x196   : > { %v1301_v19 = vrot.slane %v1297_v24, 4  ;;  %v1307_v4 = vrot.slane %v1298_v46, 4  ;;  %v1313_v55 = vrot.slane %v1299_v23, 4  ;;  %v1319_v22 = vrot.slane %v1300_v33, 4 }
 0x197   : > { %v1276_v5 = vadd.f32 %v1275_v50, %v1274_v51  ;;  %v1282_v60 = vadd.f32 %v1281_v10, %v1280_v1  ;;  %v1288_v9 = vadd.f32 %v1287_v18, %v1286_v3  ;;  %v1294_v53 = vadd.f32 %v1293_v58, %v1292_v2  ;;  %v3038_v1 = vld [vmem:[%s2390_s7 + $0x58] sm:$0xff] }
 0x198   : > { %v1302_v63 = vadd.f32 %v1301_v19, %v1297_v24  ;;  %v1308_v28 = vadd.f32 %v1307_v4, %v1298_v46  ;;  %v1314_v30 = vadd.f32 %v1313_v55, %v1299_v23  ;;  %v1320_v37 = vadd.f32 %v1319_v22, %v1300_v33 }
 0x199   : > { %v1277_v38 = vrot.slane %v1276_v5, 1  ;;  %v1283_v8 = vrot.slane %v1282_v60, 1  ;;  %v1289_v13 = vrot.slane %v1288_v9, 1  ;;  %v1295_v17 = vrot.slane %v1294_v53, 1 }
 0x19a   : > { %v1303_v21 = vrot.slane %v1302_v63, 2  ;;  %v1309_v16 = vrot.slane %v1308_v28, 2  ;;  %v1315_v43 = vrot.slane %v1314_v30, 2  ;;  %v1321_v7 = vrot.slane %v1320_v37, 2 }
 0x19b   : > { %v3014_v41 = vadd.f32 %v1267_v47, %v1266_v59  ;;  %v3016_v20 = vadd.f32 %v1277_v38, %v1276_v5  ;;  %v3018_v26 = vadd.f32 %v1283_v8, %v1282_v60  ;;  %v3020_v36 = vadd.f32 %v1289_v13, %v1288_v9  ;;  %v3033_v47 = vld [vmem:[%s2390_s7 + $0x50] sm:$0xff]  ;;  %s3063_s7 = sld [smem:[#allocation2 + $0x4]] }
 0x19c   : > { %v1304_v27 = vadd.f32 %v1303_v21, %v1302_v63  ;;  %v1310_v54 = vadd.f32 %v1309_v16, %v1308_v28  ;;  %v1316_v45 = vadd.f32 %v1315_v43, %v1314_v30  ;;  %v1322_v35 = vadd.f32 %v1321_v7, %v1320_v37 }
 0x19d   : > { %v1325_v32 = vmul.f32 %v3023_v42, %v2919_v15  ;;  %v1326_v59 = vmul.f32 %v3028_v48, %v2923_v34  ;;  %v1327_v51 = vmul.f32 %v3033_v47, %v2927_v31  ;;  %v1328_v3 = vmul.f32 %v3038_v1, %v2931_v0 }
 0x19e   : > { %v3042_v2 = vadd.f32 %v1295_v17, %v1294_v53  ;;  %v1305_v24 = vrot.slane %v1304_v27, 1  ;;  %v1311_v46 = vrot.slane %v1310_v54, 1  ;;  %v1317_v15 = vrot.slane %v1316_v45, 1 }
 0x19f   : > { %v1329_v23 = vrot.slane %v1325_v32, 4  ;;  %v1335_v33 = vrot.slane %v1326_v59, 4  ;;  %v1341_v34 = vrot.slane %v1327_v51, 4  ;;  %v1347_v50 = vrot.slane %v1328_v3, 4 }
 0x1a0   : > { %v3046_v10 = vadd.f32 %v1305_v24, %v1304_v27  ;;  %v3048_v18 = vadd.f32 %v1311_v46, %v1310_v54  ;;  %v3050_v31 = vadd.f32 %v1317_v15, %v1316_v45  ;;  %v1323_v58 = vrot.slane %v1322_v35, 1 }
 0x1a1   : > { %v1330_v0 = vadd.f32 %v1329_v23, %v1325_v32  ;;  %v1336_v19 = vadd.f32 %v1335_v33, %v1326_v59  ;;  %v1342_v4 = vadd.f32 %v1341_v34, %v1327_v51  ;;  %v1348_v55 = vadd.f32 %v1347_v50, %v1328_v3 }
 0x1a2   : > { %v1353_v22 = vmul.f32 %v3023_v42, %v2935_v49  ;;  %v1354_v5 = vmul.f32 %v3028_v48, %v2939_v11  ;;  %v1355_v60 = vmul.f32 %v3033_v47, %v2943_v29  ;;  %v1356_v9 = vmul.f32 %v3038_v1, %v2947_v25 }
 0x1a3   : > { %v1331_v53 = vrot.slane %v1330_v0, 2  ;;  %v1337_v63 = vrot.slane %v1336_v19, 2  ;;  %v1343_v28 = vrot.slane %v1342_v4, 2  ;;  %v1349_v30 = vrot.slane %v1348_v55, 2 }
 0x1a4   : > { %v1357_v37 = vrot.slane %v1353_v22, 4  ;;  %v1363_v49 = vrot.slane %v1354_v5, 4  ;;  %v1369_v38 = vrot.slane %v1355_v60, 4  ;;  %v1375_v11 = vrot.slane %v1356_v9, 4 }
 0x1a5   : > { %v1332_v8 = vadd.f32 %v1331_v53, %v1330_v0  ;;  %v1338_v13 = vadd.f32 %v1337_v63, %v1336_v19  ;;  %v1344_v29 = vadd.f32 %v1343_v28, %v1342_v4  ;;  %v1350_v17 = vadd.f32 %v1349_v30, %v1348_v55 }
 0x1a6   : > { %v1358_v21 = vadd.f32 %v1357_v37, %v1353_v22  ;;  %v1364_v25 = vadd.f32 %v1363_v49, %v1354_v5  ;;  %v1370_v16 = vadd.f32 %v1369_v38, %v1355_v60  ;;  %v1376_v43 = vadd.f32 %v1375_v11, %v1356_v9 }
 0x1a7   : > { %v1333_v7 = vrot.slane %v1332_v8, 1  ;;  %v1339_v27 = vrot.slane %v1338_v13, 1  ;;  %v1345_v54 = vrot.slane %v1344_v29, 1  ;;  %v1351_v45 = vrot.slane %v1350_v17, 1 }
 0x1a8   : > { %v1359_v32 = vrot.slane %v1358_v21, 2  ;;  %v1365_v59 = vrot.slane %v1364_v25, 2  ;;  %v1371_v51 = vrot.slane %v1370_v16, 2  ;;  %v1377_v3 = vrot.slane %v1376_v43, 2 }
 0x1a9   : > { %v3068_v24 = vadd.f32 %v1323_v58, %v1322_v35  ;;  %v3070_v46 = vadd.f32 %v1333_v7, %v1332_v8  ;;  %v3072_v15 = vadd.f32 %v1339_v27, %v1338_v13  ;;  %v3074_v23 = vadd.f32 %v1345_v54, %v1344_v29 }
 0x1aa   : > { %v1360_v33 = vadd.f32 %v1359_v32, %v1358_v21  ;;  %v1366_v34 = vadd.f32 %v1365_v59, %v1364_v25  ;;  %v1372_v50 = vadd.f32 %v1371_v51, %v1370_v16  ;;  %v1378_v0 = vadd.f32 %v1377_v3, %v1376_v43 }
 0x1ab   : > { %v3076_v19 = vadd.f32 %v1351_v45, %v1350_v17  ;;  %v3078_v4 = vstv %s1381_s11  ;;  %v1389_v55 = vstv %s1383_s15  ;;  %v3081_v22 = vstv %s3052_s0 }
 0x1ac   : > { %v1361_v5 = vrot.slane %v1360_v33, 1  ;;  %v1367_v35 = vrot.slane %v1366_v34, 1  ;;  %v1373_v58 = vrot.slane %v1372_v50, 1  ;;  %v3084_v60 = vstv %s3063_s7 }
 0x1ad   : > { %v1385_v9 = vmul.f32 %v3078_v4, %v2998_v6  ;;  %v1386_v53 = vmul.f32 %v3078_v4, %v3000_v57  ;;  %v1387_v63 = vmul.f32 %v3078_v4, %v3002_v56  ;;  %v1388_v28 = vmul.f32 %v3078_v4, %v3014_v41 }
 0x1ae   : > { %v3094_v30 = vadd.f32 %v1361_v5, %v1360_v33  ;;  %v3096_v37 = vadd.f32 %v1367_v35, %v1366_v34  ;;  %v3098_v49 = vadd.f32 %v1373_v58, %v1372_v50  ;;  %v1379_v38 = vrot.slane %v1378_v0, 1 }
 0x1af   : > { %v3100_v11 = vsub.f32 %v1385_v9, %v1389_v55  ;;  %v3102_v8 = vsub.f32 %v1386_v53, %v1389_v55  ;;  %v3104_v13 = vsub.f32 %v1387_v63, %v1389_v55  ;;  %v3106_v29 = vsub.f32 %v1388_v28, %v1389_v55 }
 0x1b0   : > { %v3110_v17 = vmul.f32 %v3078_v4, %v3016_v20  ;;  %v3114_v21 = vmul.f32 %v3078_v4, %v3018_v26  ;;  %v3118_v25 = vmul.f32 %v3078_v4, %v3020_v36  ;;  %v3122_v16 = vmul.f32 %v3078_v4, %v3042_v2 }
 0x1b1   : > { %3355 = vst [vmem:[#allocation16_spill] sm:$0xff] %v3106_v29  ;;  %v1398_v43 = vmul.f32 %v3078_v4, %v3046_v10  ;;  %v1399_v7 = vmul.f32 %v3078_v4, %v3048_v18  ;;  %v1400_v27 = vmul.f32 %v3078_v4, %v3050_v31  ;;  %v1401_v54 = vmul.f32 %v3078_v4, %v3068_v24 }
 0x1b2   : > { %v1410_v45 = vmul.f32 %v3110_v17, %v3110_v17  ;;  %v1411_v32 = vmul.f32 %v3114_v21, %v3114_v21  ;;  %v1412_v59 = vmul.f32 %v3118_v25, %v3118_v25  ;;  %v1413_v51 = vmul.f32 %v3122_v16, %v3122_v16 }
 0x1b3   : > { %v3142_v3 = vsub.f32 %v1398_v43, %v1389_v55  ;;  %v3144_v33 = vsub.f32 %v1399_v7, %v1389_v55  ;;  %v3146_v34 = vsub.f32 %v1400_v27, %v1389_v55  ;;  %v3148_v50 = vsub.f32 %v1401_v54, %v1389_v55 }
 0x1b4   : > { %v3150_v5 = vadd.f32 %v1379_v38, %v1378_v0  ;;  %v1426_v35 = vmul.f32 %v3078_v4, %v2974_v12  ;;  %v1427_v58 = vmul.f32 %v3078_v4, %v2976_v14  ;;  %v1428_v9 = vmul.f32 %v3078_v4, %v2978_v61 }
 0x1b5   : > { %v1406_v53 = vmul.f32 %v3142_v3, %v3100_v11  ;;  %v1407_v63 = vmul.f32 %v3144_v33, %v3102_v8  ;;  %v1408_v55 = vmul.f32 %v3146_v34, %v3104_v13  ;;  %v1409_v0 = vmul.f32 %v3148_v50, %v3106_v29 }
 0x1b6   : > { %v1431_v12 = vmul.f32 %v3081_v22, %v2998_v6  ;;  %v1432_v14 = vmul.f32 %v3081_v22, %v3000_v57  ;;  %v1433_v61 = vmul.f32 %v3081_v22, %v3002_v56  ;;  %v1434_v28 = vmul.f32 %v3081_v22, %v3014_v41 }
 0x1b7   : > { %v1414_v38 = vsub.f32 %v1406_v53, %v1410_v45  ;;  %v1415_v43 = vsub.f32 %v1407_v63, %v1411_v32  ;;  %v1416_v7 = vsub.f32 %v1408_v55, %v1412_v59  ;;  %v1417_v27 = vsub.f32 %v1409_v0, %v1413_v51 }
 0x1b8   : > { %v1436_v54 = vmul.f32 %v3084_v60, %v3016_v20  ;;  %v1437_v29 = vmul.f32 %v3084_v60, %v3018_v26  ;;  %v1438_v6 = vmul.f32 %v3084_v60, %v3020_v36  ;;  %v1439_v57 = vmul.f32 %v3084_v60, %v3042_v2 }
 0x1b9   : > { %1986 = vrcp.f32 %v1414_v38  ;;  %v1429_v56 = vmul.f32 %v3078_v4, %v2980_v44  ;;  %v3185_v41 = vstv %s3124_s16  ;;  %v1453_v45 = vstv %s3044_s8  ;;  %s2091_s8 = scalar_lea.vmem %s2090_s12, 128 }
 0x1ba   : > { %1988 = vrcp.f32 %v1415_v43  ;;  %v1440_v32 = vadd.f32 %v1436_v54, %v1431_v12  ;;  %v1441_v59 = vadd.f32 %v1437_v29, %v1432_v14  ;;  %v1442_v51 = vadd.f32 %v1438_v6, %v1433_v61  ;;  %p2093_p6 = scmp.lt.s32.totalorder %s2091_s8, %s2085_s13 }
 0x1bb   : > { %1990 = vrcp.f32 %v1416_v7  ;;  %v1443_v53 = vadd.f32 %v1439_v57, %v1434_v28  ;;  %v1445_v63 = vmul.f32 %v3185_v41, %v3070_v46  ;;  %v1446_v55 = vmul.f32 %v3185_v41, %v3072_v15 }
 0x1bc   : > { %1992 = vrcp.f32 %v1417_v27  ;;  %v1447_v0 = vmul.f32 %v3185_v41, %v3074_v23  ;;  %v1448_v44 = vmul.f32 %v3185_v41, %v3076_v19  ;;  %v1462_v12 = vmul.f32 %v3078_v4, %v2982_v39  ;;  %p2094_p12 = por %p2093_p6, %p2092_p7 }
 0x1bd   : > { %v1449_v29 = vadd.f32 %v1445_v63, %v1440_v32  ;;  %v1450_v14 = vadd.f32 %v1446_v55, %v1441_v59  ;;  %v1463_v61 = vmul.f32 %v3078_v4, %v2984_v40  ;;  %v1464_v46 = vmul.f32 %v3078_v4, %v2986_v52 }
 0x1be   : > { %v1451_v28 = vadd.f32 %v1447_v0, %v1442_v51  ;;  %v1452_v15 = vadd.f32 %v1448_v44, %v1443_v53  ;;  %v1466_v38 = vmul.f32 %v3081_v22, %v3016_v20  ;;  %v1467_v23 = vmul.f32 %v3081_v22, %v3018_v26  ;;  %p2095_p9 = pnand %p2094_p12, %p2088_p2 }
 0x1bf   : > { %v1454_v19 = vmul.f32 %v1453_v45, %v1449_v29  ;;  %v1455_v43 = vmul.f32 %v1453_v45, %v1450_v14  ;;  %v1468_v39 = vmul.f32 %v3081_v22, %v3020_v36  ;;  %v1469_v7 = vmul.f32 %v3081_v22, %v3042_v2 }
 0x1c0   : > { %v1456_v40 = vmul.f32 %v1453_v45, %v1451_v28  ;;  %v1457_v27 = vmul.f32 %v1453_v45, %v1452_v15  ;;  %v1470_v52 = vmul.f32 %v3084_v60, %v3046_v10  ;;  %v1471_v54 = vmul.f32 %v3084_v60, %v3048_v18 }
 0x1c1   : > { %v1458_v20 = vsub.f32 %v1426_v35, %v1454_v19  ;;  %v1459_v6 = vsub.f32 %v1427_v58, %v1455_v43  ;;  %v1472_v26 = vmul.f32 %v3084_v60, %v3050_v31  ;;  %v1473_v57 = vmul.f32 %v3084_v60, %v3068_v24 }
 0x1c2   : > { %v1460_v36 = vsub.f32 %v1428_v9, %v1456_v40  ;;  %v1461_v32 = vsub.f32 %v1429_v56, %v1457_v27  ;;  %v1474_v59 = vadd.f32 %v1470_v52, %v1466_v38  ;;  %v1475_v2 = vadd.f32 %v1471_v54, %v1467_v23  ;;  %v3357_v54 = vld [vmem:[#allocation16_spill] sm:$0xff] }
 0x1c3   : > { %v1987_v51 = vpop.eup %1986  ;;  %v1476_v53 = vadd.f32 %v1472_v26, %v1468_v39  ;;  %v1477_v63 = vadd.f32 %v1473_v57, %v1469_v7  ;;  %v1478_v10 = vmul.f32 %v3185_v41, %v3094_v30  ;;  %v1479_v18 = vmul.f32 %v3185_v41, %v3096_v37 }
 0x1c4   : > { %v1989_v35 = vpop.eup %1988  ;;  %v1465_v31 = vmul.f32 %v3078_v4, %v2996_v62  ;;  %v1480_v24 = vmul.f32 %v3185_v41, %v3098_v49  ;;  %v1481_v58 = vmul.f32 %v3185_v41, %v3150_v5  ;;  %v1494_v9 = vmul.f32 %v1458_v20, %v3142_v3 }
 0x1c5   : > { %v1991_v56 = vpop.eup %1990  ;;  %v1482_v55 = vadd.f32 %v1478_v10, %v1474_v59  ;;  %v1483_v0 = vadd.f32 %v1479_v18, %v1475_v2  ;;  %v1495_v30 = vmul.f32 %v1459_v6, %v3144_v33  ;;  %v1496_v44 = vmul.f32 %v1460_v36, %v3146_v34  ;;  %v3356_v33 = vld [vmem:[#allocation17_spill] sm:$0xff] }
 0x1c6   : > { %v1993_v37 = vpop.eup %1992  ;;  %v1484_v29 = vadd.f32 %v1480_v24, %v1476_v53  ;;  %v1485_v14 = vadd.f32 %v1481_v58, %v1477_v63  ;;  %v1497_v62 = vmul.f32 %v1461_v32, %v3148_v50  ;;  %v1514_v4 = vmul.f32 %v1458_v20, %v3110_v17  ;;  %v3358_v24 = vld [vmem:[#allocation15_spill] sm:$0xff] }
 0x1c7   : > { %v1486_v49 = vmul.f32 %v1482_v55, %v1453_v45  ;;  %v1487_v28 = vmul.f32 %v1483_v0, %v1453_v45  ;;  %v1515_v5 = vmul.f32 %v1459_v6, %v3114_v21  ;;  %v1516_v3 = vmul.f32 %v1460_v36, %v3118_v25 }
 0x1c8   : > { %v1488_v15 = vmul.f32 %v1484_v29, %v1453_v45  ;;  %v1489_v38 = vmul.f32 %v1485_v14, %v1453_v45  ;;  %v1517_v23 = vmul.f32 %v1461_v32, %v3122_v16  ;;  %v1526_v34 = vmul.f32 %v3084_v60, %v3356_v33 }
 0x1c9   : > { %v1490_v19 = vsub.f32 %v1462_v12, %v1486_v49  ;;  %v1491_v43 = vsub.f32 %v1463_v61, %v1487_v28  ;;  %v1528_v50 = vmul.f32 %v3023_v42, %v3185_v41  ;;  %v1529_v39 = vmul.f32 %v3028_v48, %v3185_v41 }
 0x1ca   : > { %v1492_v7 = vsub.f32 %v1464_v46, %v1488_v15  ;;  %v1493_v40 = vsub.f32 %v1465_v31, %v1489_v38  ;;  %v1530_v27 = vmul.f32 %v3033_v47, %v3185_v41  ;;  %v1531_v45 = vmul.f32 %v3038_v1, %v3185_v41 }
 0x1cb   : > { %v1498_v52 = vmul.f32 %v1490_v19, %v3110_v17  ;;  %v1499_v60 = vmul.f32 %v1491_v43, %v3114_v21  ;;  %v1510_v12 = vmul.f32 %v1490_v19, %v3100_v11  ;;  %v1511_v61 = vmul.f32 %v1491_v43, %v3102_v8 }
 0x1cc   : > { %v1500_v42 = vmul.f32 %v1492_v7, %v3118_v25  ;;  %v1501_v48 = vmul.f32 %v1493_v40, %v3122_v16  ;;  %v1512_v46 = vmul.f32 %v1492_v7, %v3104_v13  ;;  %v1513_v20 = vmul.f32 %v1493_v40, %v3357_v54 }
 0x1cd   : > { %v1502_v47 = vsub.f32 %v1494_v9, %v1498_v52  ;;  %v1503_v6 = vsub.f32 %v1495_v30, %v1499_v60  ;;  %v1518_v26 = vsub.f32 %v1510_v12, %v1514_v4  ;;  %v1519_v1 = vsub.f32 %v1511_v61, %v1515_v5 }
 0x1ce   : > { %v1504_v41 = vsub.f32 %v1496_v44, %v1500_v42  ;;  %v1505_v17 = vsub.f32 %v1497_v62, %v1501_v48  ;;  %v1520_v57 = vsub.f32 %v1512_v46, %v1516_v3  ;;  %v1521_v21 = vsub.f32 %v1513_v20, %v1517_v23 }
 0x1cf   : > { %v1506_v36 = vmul.f32 %v1987_v51, %v1502_v47  ;;  %v1507_v11 = vmul.f32 %v1989_v35, %v1503_v6  ;;  %v1522_v32 = vmul.f32 %v1987_v51, %v1518_v26  ;;  %v1523_v8 = vmul.f32 %v1989_v35, %v1519_v1 }
 0x1d0   : > { %v1508_v59 = vmul.f32 %v1991_v56, %v1504_v41  ;;  %v1509_v25 = vmul.f32 %v1993_v37, %v1505_v17  ;;  %v1524_v2 = vmul.f32 %v1991_v56, %v1520_v57  ;;  %v1525_v16 = vmul.f32 %v1993_v37, %v1521_v21 }
 0x1d1   : > { %v1536_v53 = vcombine.low %v1528_v50, %v1529_v39  ;;  %v1537_v13 = vcombine.low %v1530_v27, %v1531_v45  ;;  %v1566_v63 = vcombine.low %v1506_v36, %v1507_v11  ;;  %v1596_v10 = vcombine.low %v1522_v32, %v1523_v8 }
 0x1d2   : > { %v1567_v18 = vcombine.low %v1508_v59, %v1509_v25  ;;  %v1597_v31 = vcombine.low %v1524_v2, %v1525_v16  ;;  %v1527_v56 = vadd.f32 %v1526_v34, %v3081_v22  ;;  %v1623_v5 = vstv %s1780_s10 }
 0x1d3   : > { %v1544_v58 = vrot.slane %v1536_v53, %v3358_v24  ;;  %v1551_v9 = vrot.slane %v1537_v13, %v3358_v24  ;;  %v1574_v55 = vrot.slane %v1566_v63, %v3358_v24  ;;  %v1604_v0 = vrot.slane %v1596_v10, %v3358_v24 }
 0x1d4   : > { %v1581_v51 = vrot.slane %v1567_v18, %v3358_v24  ;;  %v1611_v35 = vrot.slane %v1597_v31, %v3358_v24  ;;  %v3359_v34 = vlaneseq }
 0x1d5   : > { %v1552_v30 = vcombine.low %v1544_v58, %v1551_v9 }
 0x1d6   : > { %v1582_v44 = vcombine.low %v1574_v55, %v1581_v51  ;;  %v1612_v37 = vcombine.low %v1604_v0, %v1611_v35  ;;  %vm1633_vm0 = vcmp.lt.s32.totalorder %v3359_v34, 512 }
 0x1d7   : > { %v1559_v29 = vrot.slane %v1552_v30, %v3358_v24 }
 0x1d8   : > { %v1589_v14 = vrot.slane %v1582_v44, %v3358_v24  ;;  %v1619_v62 = vrot.slane %v1612_v37, %v3358_v24 }
 0x1d9   : > { %v1561_v4 = vadd.f32 %v1559_v29, %v1527_v56 }
 0x1da   : > { %v1621_v49 = vmul.f32 %v1619_v62, %v3356_v33 }
 0x1db   : > { %v1591_v28 = vadd.f32 %v1589_v14, %v1561_v4 }
 0x1dd   : > { %v1622_v3 = vadd.f32 %v1621_v49, %v1591_v28 }
 0x1df   : > { %v1624_v15 = vadd.f32 %v1623_v5, %v1622_v3 }
 0x1e1   : > { %v1904_v22 = vmul.f32 -1.442695, %v1624_v15 }
 0x1e3   : > { %1994 = vpow2.f32 %v1904_v22 }
 0x1ed   : > { %v1995_v38 = vpop.eup %1994 }
 0x1ee   : > { %v1628_v23 = vadd.f32 1.0, %v1995_v38 }
 0x1f0   : > { %1996 = vrcp.f32 %v1628_v23 }
 0x1fa   : > { %v1997_v33 = vpop.eup %1996 }
 0x1fb   : > { %1635 = vst.msk [vmem:[%s310_s9] sm:$0xf] %vm1633_vm0, %v1997_v33 }
 0x1fc   : > { %2098 = shalt.err (!%p2095_p9)
}
 0x1fd   : > { %s2099_s27 = scalar_lea.hbm %s3271_s14, 64  ;;  %s2103_s7 = scalar_lea.hbm %s3320_s5, 128 }
 0x1fe   : > { %p2100_p10 = scmp.ne.s32.totalorder %s3271_s14, %s2099_s27  ;;  %p2104_p8 = scmp.lt.u32.totalorder %s3271_s14, %s3320_s5 }
 0x1ff   : > { %p2105_p3 = scmp.lt.u32.totalorder %s2103_s7, %s2099_s27  ;;  %p2107_p4 = scmp.lt.u32.totalorder %s2099_s27, %s3271_s14 }
 0x200   : > { %p2101_p1 = pnand %p2100_p10, %p3360_p11 }
 0x201   : > { %p2106_p13 = por %p2105_p3, %p2104_p8 }
 0x202   : > { %p2102_p5 = pneg %p2101_p1 }
 0x203   : > { %p2108_p0 = por %p2107_p4, %p2106_p13 }
 0x205   : > { %p2109_p2 = pnand %p2108_p0, %p2102_p5 }
 0x207   : > { %2112 = shalt.err (!%p2109_p2)
}
 0x208   : > { %1923 = dma.vmem_to_hbm [thread:$0]  (%p3360_p11), %s3273_s26, 64, %s3271_s14, %s1637_s25  }
 0x209 PF: > { %s1663_s16 = sand.u32 1, %s2147_s18   ;;  %p3361_p7 = scmp.ne.s32.totalorder %s3338_s6, 0 }
 0x20a   : > { %p3362_p6 = scmp.ge.s32.totalorder %s2159_s21, 2  ;;  %s1664_s10 = scalar_lea.sflag [#allocation4], %s1663_s16 }
 0x20c   : > { %p1937_p12 = pnand %p3362_p6, %p3361_p7 }
 0x20e   : > { %2142 = dma.done.wait (!%p1937_p12), %s1664_s10, 64  }
 0x20f   : > { %2144 = vsyncadd (!%p1937_p12), %s1664_s10, 4294967232  ;;  %s3363_s29 = sld [smem:[#allocation14_spill]]  ;;  %p22_p9 = scmp.ge.s32.totalorder %s2225_s24, 4  }
 0x210   : > { %s3364_s18 = smov %s2151_s19  ;;  %s3365_s19 = smov %s2155_s20 }
 0x211   : > { %s3367_s21 = smov %s2225_s24  ;;  %24 = sbr.rel (!%p22_p9) target bundleno = 11 (0xb), region = 115 }
 0x215   : > { %s3366_s20 = smov %s3363_s29 }
 0x218   :  { %1669 = vsyncpa [#allocation3], 1 }
 0x219   :  { %1671 = vsyncpa [#allocation3 + $0x1], 1 }
 0x21a   :  { %1672 = vsyncpa [#allocation8], 1 }
 0x21b   :  { %1674 = vsyncpa [#allocation8 + $0x1], 1 }
 0x21c   :  { %1675 = vsyncpa [#allocation4], 1 }
 0x21d   :  { %1677 = vsyncpa [#allocation4 + $0x1], 1 }
 0x21e   :  { %1678 = vsyncpa [#allocation5], 1 }
 0x21f   :  { %1680 = vsyncpa [#allocation5 + $0x1], 1 }

</bundles_post_ra>
